<compile_context>
chip_gen: v6e
topology: v6e:2x2x1
jax: 0.10.0
libtpu: 0.0.40
codegen_flags: <defaults>
</compile_context>

<pallas_src>
import functools
import math

import jax
import jax.numpy as jnp
from jax.experimental import pallas as pl
from jax.experimental.pallas import tpu as pltpu

# ----------------------------- config (small) -------------------------------
CFG = dict(
    vocab=64,
    hidden=32,
    heads=4,
    layers=2,
    intermediate=64,
    max_pos=32,
    type_vocab=2,
    batch=2,
    seq=8,
    ln_eps=1e-12,
)

# Matmul operand dtype. Keep f32 here to match the fp32 PyTorch reference
# exactly; flip to jnp.bfloat16 on v6e/v7x for ~2x MXU throughput
# (accumulation stays f32 via preferred_element_type).
MXU_DTYPE = jnp.float32


# --------------------------- in-kernel math helpers --------------------------
def _mm(a, b, trans_b=False):
    """2-D matmul on the MXU with f32 accumulation."""
    a = a.astype(MXU_DTYPE)
    b = b.astype(MXU_DTYPE)
    dn = (((1,), (1 if trans_b else 0,)), ((), ()))
    return jax.lax.dot_general(a, b, dn, preferred_element_type=jnp.float32)


def _ln(x, g, b, eps):
    """LayerNorm over the last axis (biased variance, matches torch)."""
    mu = jnp.mean(x, axis=-1, keepdims=True)
    var = jnp.mean(jnp.square(x - mu), axis=-1, keepdims=True)
    return (x - mu) * jax.lax.rsqrt(var + eps) * g + b


def _erf(x):
    # TODO(synk): erf approximated (Abramowitz & Stegun 7.1.26, |err| <= 1.5e-7)
    # from exp/mul/select only, to avoid relying on a lax.erf Mosaic lowering.
    a1, a2, a3, a4, a5 = 0.254829592, -0.284496736, 1.421413741, -1.453152027, 1.061405429
    pcoef = 0.3275911
    sign = jnp.where(x < 0.0, -1.0, 1.0)
    z = jnp.abs(x)
    t = 1.0 / (1.0 + pcoef * z)
    poly = ((((a5 * t + a4) * t + a3) * t + a2) * t + a1) * t
    return sign * (1.0 - poly * jnp.exp(-z * z))


def _gelu(x):
    # Exact (erf-based) GELU, matching HF hidden_act="gelu".
    return 0.5 * x * (1.0 + _erf(x * 0.7071067811865476))


# ------------------------------ Pallas kernels -------------------------------
def _layernorm_kernel(x_ref, g_ref, b_ref, o_ref, *, eps):
    o_ref[...] = _ln(x_ref[...], g_ref[...], b_ref[...], eps)


def layernorm(x, g, b, eps=CFG["ln_eps"]):
    M, H = x.shape
    return pl.pallas_call(
        functools.partial(_layernorm_kernel, eps=eps),
        out_shape=jax.ShapeDtypeStruct((M, H), jnp.float32),
        grid=(1,),
        in_specs=[
            pl.BlockSpec((M, H), lambda i: (0, 0)),
            pl.BlockSpec((1, H), lambda i: (0, 0)),
            pl.BlockSpec((1, H), lambda i: (0, 0)),
        ],
        out_specs=pl.BlockSpec((M, H), lambda i: (0, 0)),
    )(x, g, b)


def _layer_kernel(x_ref, m_ref, wqkv_ref, bqkv_ref, wo_ref, bo_ref,
                  ln1g_ref, ln1b_ref, wi_ref, bi_ref, wo2_ref, bo2_ref,
                  ln2g_ref, ln2b_ref, o_ref, *, nh, dh, eps, scale):
    """One full transformer encoder layer for one batch row (grid over B)."""
    H = nh * dh
    x = x_ref[0]          # (S, H)
    mask = m_ref[0]       # (1, S) additive mask; broadcasts over query rows

    # --- fused QKV projection: one matmul, x read once ---
    qkv = _mm(x, wqkv_ref[...]) + bqkv_ref[...]              # (S, 3H)

    # --- attention: heads split in-kernel (static slices, nh unrolled) ---
    ctx_heads = []
    for h in range(nh):
        qh = qkv[:, h * dh:(h + 1) * dh]                     # (S, dh)
        kh = qkv[:, H + h * dh:H + (h + 1) * dh]
        vh = qkv[:, 2 * H + h * dh:2 * H + (h + 1) * dh]
        s = _mm(qh, kh, trans_b=True) * scale + mask         # (S, S)
        s = s - jnp.max(s, axis=-1, keepdims=True)
        p = jnp.exp(s)
        p = p * pl.reciprocal(jnp.sum(p, axis=-1, keepdims=True), approx=True)
        ctx_heads.append(_mm(p, vh))                         # (S, dh)
    ctx = jnp.concatenate(ctx_heads, axis=-1)                # (S, H)

    # --- output projection + residual + LN1 ---
    x1 = _ln(_mm(ctx, wo_ref[...]) + bo_ref[...] + x,
             ln1g_ref[...], ln1b_ref[...], eps)

    # --- FFN: dense -> exact GELU -> dense, + residual + LN2 (fused epilogue) ---
    inter = _gelu(_mm(x1, wi_ref[...]) + bi_ref[...])        # (S, I)
    y = _mm(inter, wo2_ref[...]) + bo2_ref[...] + x1
    o_ref[0] = _ln(y, ln2g_ref[...], ln2b_ref[...], eps)


def transformer_layer(x, ext_mask, lyr, cfg):
    """x: (B, S, H) f32; ext_mask: (B, 1, S) additive. One pallas_call per layer."""
    B, S, H = x.shape
    nh = cfg["heads"]
    dh = H // nh
    I = cfg["intermediate"]
    full = lambda shape: pl.BlockSpec(shape, lambda b: (0, 0))

    kern = functools.partial(_layer_kernel, nh=nh, dh=dh, eps=cfg["ln_eps"],
                             scale=1.0 / math.sqrt(dh))   # python float -> no captured tracer
    return pl.pallas_call(
        kern,
        out_shape=jax.ShapeDtypeStruct((B, S, H), jnp.float32),
        grid=(B,),
        in_specs=[
            pl.BlockSpec((1, S, H), lambda b: (b, 0, 0)),    # activations
            pl.BlockSpec((1, 1, S), lambda b: (b, 0, 0)),    # additive mask
            full((H, 3 * H)), full((1, 3 * H)),              # fused QKV
            full((H, H)), full((1, H)),                      # attn out proj
            full((1, H)), full((1, H)),                      # LN1
            full((H, I)), full((1, I)),                      # FFN in
            full((I, H)), full((1, H)),                      # FFN out
            full((1, H)), full((1, H)),                      # LN2
        ],
        out_specs=pl.BlockSpec((1, S, H), lambda b: (b, 0, 0)),
        compiler_params=pltpu.CompilerParams(
            dimension_semantics=("parallel",)),              # shard batch across TCs (v7x)
    )(x, ext_mask, lyr["wqkv"], lyr["bqkv"], lyr["wo"], lyr["bo"],
      lyr["ln1_g"], lyr["ln1_b"], lyr["wi"], lyr["bi"],
      lyr["wo2"], lyr["bo2"], lyr["ln2_g"], lyr["ln2_b"])


def _heads_kernel(x_ref, cls_ref, mlm_w_ref, mlm_b_ref, mlng_ref, mlnb_ref,
                  emb_ref, dec_b_ref, pool_w_ref, pool_b_ref,
                  nsp_w_ref, nsp_b_ref, mlm_o_ref, nsp_o_ref, *, eps):
    # MLM transform: dense -> exact GELU -> LN (fused).
    t = _gelu(_mm(x_ref[...], mlm_w_ref[...]) + mlm_b_ref[...])
    t = _ln(t, mlng_ref[...], mlnb_ref[...], eps)
    # Tied decoder: contract over H against the UNtransposed embedding table.
    mlm_o_ref[...] = _mm(t, emb_ref[...], trans_b=True) + dec_b_ref[...]
    # Pooler (tanh on CLS) + NSP head folded into the epilogue.
    pooled = jnp.tanh(_mm(cls_ref[...], pool_w_ref[...]) + pool_b_ref[...])
    nsp_o_ref[...] = _mm(pooled, nsp_w_ref[...]) + nsp_b_ref[...]


def pretrain_heads(x2d, cls_tokens, params, cfg):
    M, H = x2d.shape
    B = cls_tokens.shape[0]
    V = cfg["vocab"]
    spec = lambda shape: pl.BlockSpec(shape, lambda i: (0,) * len(shape))
    return pl.pallas_call(
        functools.partial(_heads_kernel, eps=cfg["ln_eps"]),
        out_shape=(jax.ShapeDtypeStruct((M, V), jnp.float32),
                   jax.ShapeDtypeStruct((B, 2), jnp.float32)),
        grid=(1,),
        in_specs=[spec((M, H)), spec((B, H)),
                  spec((H, H)), spec((1, H)), spec((1, H)), spec((1, H)),
                  spec((V, H)), spec((1, V)),
                  spec((H, H)), spec((1, H)),
                  spec((H, 2)), spec((1, 2))],
        out_specs=(spec((M, V)), spec((B, 2))),
    )(x2d, cls_tokens, params["mlm_w"], params["mlm_b"],
      params["mlm_ln_g"], params["mlm_ln_b"],
      params["word_emb"], params["decoder_b"],
      params["pool_w"], params["pool_b"],
      params["nsp_w"], params["nsp_b"])


# ------------------------------ parameter init -------------------------------
def init_params(key, cfg):
    H, V, I = cfg["hidden"], cfg["vocab"], cfg["intermediate"]
    std = 0.02

    def nrm(k, shape):
        return std * jax.random.normal(k, shape, dtype=jnp.float32)

    keys = jax.random.split(key, 8 + cfg["layers"])
    p = dict(
        word_emb=nrm(keys[0], (V, H)),
        pos_emb=nrm(keys[1], (cfg["max_pos"], H)),
        type_emb=nrm(keys[2], (cfg["type_vocab"], H)),
        emb_ln_g=jnp.ones((1, H), jnp.float32),
        emb_ln_b=jnp.zeros((1, H), jnp.float32),
        pool_w=nrm(keys[3], (H, H)),
        pool_b=jnp.zeros((1, H), jnp.float32),
        mlm_w=nrm(keys[4], (H, H)),
        mlm_b=jnp.zeros((1, H), jnp.float32),
        mlm_ln_g=jnp.ones((1, H), jnp.float32),
        mlm_ln_b=jnp.zeros((1, H), jnp.float32),
        decoder_b=jnp.zeros((1, V), jnp.float32),     # decoder weight tied to word_emb
        nsp_w=nrm(keys[5], (H, 2)),
        nsp_b=jnp.zeros((1, 2), jnp.float32),
    )
    layers = []
    for li in range(cfg["layers"]):
        lk = jax.random.split(keys[8 + li], 6)
        wq, wk, wv = nrm(lk[0], (H, H)), nrm(lk[1], (H, H)), nrm(lk[2], (H, H))
        layers.append(dict(
            wqkv=jnp.concatenate([wq, wk, wv], axis=1),       # fused (H, 3H) QKV weight
            bqkv=jnp.zeros((1, 3 * H), jnp.float32),
            wo=nrm(lk[3], (H, H)), bo=jnp.zeros((1, H), jnp.float32),
            ln1_g=jnp.ones((1, H), jnp.float32), ln1_b=jnp.zeros((1, H), jnp.float32),
            wi=nrm(lk[4], (H, I)), bi=jnp.zeros((1, I), jnp.float32),
            wo2=nrm(lk[5], (I, H)), bo2=jnp.zeros((1, H), jnp.float32),
            ln2_g=jnp.ones((1, H), jnp.float32), ln2_b=jnp.zeros((1, H), jnp.float32),
        ))
    p["layers"] = layers
    return p


# -------------------------------- loss helpers --------------------------------
def _ce_ignore(logits, labels, ignore=-100):
    # CrossEntropyLoss(ignore_index=-100, reduction='mean')
    logp = jax.nn.log_softmax(logits, axis=-1)
    valid = (labels != ignore).astype(jnp.float32)
    safe = jnp.where(labels == ignore, 0, labels)
    nll = -jnp.take_along_axis(logp, safe[:, None], axis=-1)[:, 0]
    return jnp.sum(nll * valid) / jnp.sum(valid)


def _ce(logits, labels):
    logp = jax.nn.log_softmax(logits, axis=-1)
    return -jnp.mean(jnp.take_along_axis(logp, labels[:, None], axis=-1)[:, 0])


# -------------------------------- forward pass --------------------------------
def prebert_forward(params, input_ids, attention_mask, token_type_ids,
                    mlm_labels, nsp_label, cfg=CFG):
    B, S = input_ids.shape
    H, V = cfg["hidden"], cfg["vocab"]

    # --- embeddings (gathers stay in XLA; LayerNorm in Pallas) ---
    pos_ids = jnp.arange(S)
    emb = (params["word_emb"][input_ids]
           + params["pos_emb"][pos_ids][None, :, :]
           + params["type_emb"][token_type_ids])                       # (B, S, H)
    x = layernorm(emb.reshape(B * S, H), params["emb_ln_g"], params["emb_ln_b"])
    # TODO(synk): dropout (train-mode randomness) treated as identity (eval semantics)
    x = x.reshape(B, S, H)

    # Raw additive mask, kept at (B, 1, S); broadcast to (S, S) happens in-kernel.
    ext_mask = ((1.0 - attention_mask.astype(jnp.float32)) * -10000.0)[:, None, :]

    # --- encoder: one fused pallas_call per layer ---
    for lyr in params["layers"]:
        x = transformer_layer(x, ext_mask, lyr, cfg)

    seq_2d = x.reshape(B * S, H)
    cls_tokens = x[:, 0, :]                                            # (B, H)

    # --- fused MLM head (+ pooler/NSP epilogue) ---
    prediction_logits_2d, seq_relationship_logits = pretrain_heads(
        seq_2d, cls_tokens, params, cfg)
    prediction_logits = prediction_logits_2d.reshape(B, S, V)

    # --- losses (glue in JAX) ---
    mlm_loss = _ce_ignore(prediction_logits.reshape(-1, V), mlm_labels.reshape(-1))
    nsp_loss = _ce(seq_relationship_logits, nsp_label)
    loss = mlm_loss + nsp_loss

    return loss, seq_relationship_logits, prediction_logits


# ------------------------------------ main ------------------------------------
if __name__ == "__main__":
    key = jax.random.PRNGKey(0)
    k_param, k_ids, k_lbl, k_msk, k_nsp = jax.random.split(key, 5)

    cfg = CFG
    B, S, V = cfg["batch"], cfg["seq"], cfg["vocab"]

    params = init_params(k_param, cfg)

    input_ids = jax.random.randint(k_ids, (B, S), 0, V, dtype=jnp.int32)
    attention_mask = jnp.ones((B, S), jnp.int32).at[1, S - 2:].set(0)  # pad tail of seq 1
    token_type_ids = jnp.concatenate(
        [jnp.zeros((B, S // 2), jnp.int32), jnp.ones((B, S - S // 2), jnp.int32)], axis=1
    )
    raw_lbl = jax.random.randint(k_lbl, (B, S), 0, V, dtype=jnp.int32)
    keep = jax.random.bernoulli(k_msk, 0.5, (B, S))
    keep = keep.at[:, 0].set(True)          # guarantee at least one valid MLM label
    mlm_labels = jnp.where(keep, raw_lbl, -100)
    nsp_label = jax.random.randint(k_nsp, (B,), 0, 2, dtype=jnp.int32)

    fwd = jax.jit(prebert_forward)
    loss, nsp_logits, mlm_logits = fwd(
        params, input_ids, attention_mask, token_type_ids, mlm_labels, nsp_label
    )
    jax.block_until_ready((loss, nsp_logits, mlm_logits))

    assert loss.shape == ()
    assert nsp_logits.shape == (B, 2)
    assert mlm_logits.shape == (B, S, V)
    assert bool(jnp.isfinite(loss))
    print("KERNEL_OK")
</pallas_src>

<mosaic_0001>
module attributes {stable_mosaic.version = 11 : i64} {
  func.func @_layernorm_kernel(%arg0: i32, %arg1: memref<16x32xf32, #tpu.memory_space<vmem>>, %arg2: memref<1x32xf32, #tpu.memory_space<vmem>>, %arg3: memref<1x32xf32, #tpu.memory_space<vmem>>, %arg4: memref<16x32xf32, #tpu.memory_space<vmem>>) attributes {dimension_semantics = [#tpu.dimension_semantics<arbitrary>], iteration_bounds = array<i64: 1>, scalar_prefetch = 0 : i64, scratch_operands = 0 : i64, tpu.core_type = #tpu.core_type<tc>, window_params = [{pipeline_mode = #tpu.pipeline_mode<synchronous>, transform_indices = @transform_0, window_bounds = array<i64: 16, 32>}, {pipeline_mode = #tpu.pipeline_mode<synchronous>, transform_indices = @transform_1, window_bounds = array<i64: 1, 32>}, {pipeline_mode = #tpu.pipeline_mode<synchronous>, transform_indices = @transform_2, window_bounds = array<i64: 1, 32>}, {pipeline_mode = #tpu.pipeline_mode<synchronous>, transform_indices = @transform_3, window_bounds = array<i64: 16, 32>}]} {
    %c0 = arith.constant 0 : index
    %c0_0 = arith.constant 0 : index
    %0 = vector.load %arg1[%c0, %c0_0] : memref<16x32xf32, #tpu.memory_space<vmem>>, vector<16x32xf32>
    %c0_1 = arith.constant 0 : index
    %c0_2 = arith.constant 0 : index
    %1 = vector.load %arg2[%c0_1, %c0_2] : memref<1x32xf32, #tpu.memory_space<vmem>>, vector<1x32xf32>
    %c0_3 = arith.constant 0 : index
    %c0_4 = arith.constant 0 : index
    %2 = vector.load %arg3[%c0_3, %c0_4] : memref<1x32xf32, #tpu.memory_space<vmem>>, vector<1x32xf32>
    %cst = arith.constant dense<0.000000e+00> : vector<16xf32>
    %3 = vector.multi_reduction <add>, %0, %cst [1] : vector<16x32xf32> to vector<16xf32>
    %4 = vector.shape_cast %3 : vector<16xf32> to vector<16x1xf32>
    %cst_5 = arith.constant 3.200000e+01 : f32
    %5 = vector.broadcast %cst_5 : f32 to vector<16x1xf32>
    %6 = arith.divf %4, %5 : vector<16x1xf32>
    %7 = vector.broadcast %6 : vector<16x1xf32> to vector<16x32xf32>
    %8 = arith.subf %0, %7 : vector<16x32xf32>
    %9 = arith.mulf %8, %8 : vector<16x32xf32>
    %cst_6 = arith.constant dense<0.000000e+00> : vector<16xf32>
    %10 = vector.multi_reduction <add>, %9, %cst_6 [1] : vector<16x32xf32> to vector<16xf32>
    %11 = vector.shape_cast %10 : vector<16xf32> to vector<16x1xf32>
    %cst_7 = arith.constant 3.200000e+01 : f32
    %12 = vector.broadcast %cst_7 : f32 to vector<16x1xf32>
    %13 = arith.divf %11, %12 : vector<16x1xf32>
    %14 = vector.broadcast %6 : vector<16x1xf32> to vector<16x32xf32>
    %15 = arith.subf %0, %14 : vector<16x32xf32>
    %cst_8 = arith.constant 9.99999996E-13 : f32
    %16 = vector.broadcast %cst_8 : f32 to vector<16x1xf32>
    %17 = arith.addf %13, %16 : vector<16x1xf32>
    %18 = math.rsqrt %17 : vector<16x1xf32>
    %19 = vector.broadcast %18 : vector<16x1xf32> to vector<16x32xf32>
    %20 = arith.mulf %15, %19 : vector<16x32xf32>
    %21 = vector.broadcast %1 : vector<1x32xf32> to vector<16x32xf32>
    %22 = arith.mulf %20, %21 : vector<16x32xf32>
    %23 = vector.broadcast %2 : vector<1x32xf32> to vector<16x32xf32>
    %24 = arith.addf %22, %23 : vector<16x32xf32>
    %c0_9 = arith.constant 0 : index
    %c0_10 = arith.constant 0 : index
    %25 = vector.load %arg4[%c0_9, %c0_10] : memref<16x32xf32, #tpu.memory_space<vmem>>, vector<16x32xf32>
    tpu.vector_store %arg4[%c0_9, %c0_10], %24 {strides = array<i32>} : memref<16x32xf32, #tpu.memory_space<vmem>>, vector<16x32xf32>,
    return
  }
  func.func @transform_0(%arg0: i32) -> (i32, i32) {
    %c0_i32 = arith.constant 0 : i32
    %c0_i32_0 = arith.constant 0 : i32
    %c0_i32_1 = arith.constant 0 : i32
    return %c0_i32, %c0_i32_0 : i32, i32
  }
  func.func @transform_1(%arg0: i32) -> (i32, i32) {
    %c0_i32 = arith.constant 0 : i32
    %c0_i32_0 = arith.constant 0 : i32
    %c0_i32_1 = arith.constant 0 : i32
    return %c0_i32, %c0_i32_0 : i32, i32
  }
  func.func @transform_2(%arg0: i32) -> (i32, i32) {
    %c0_i32 = arith.constant 0 : i32
    %c0_i32_0 = arith.constant 0 : i32
    %c0_i32_1 = arith.constant 0 : i32
    return %c0_i32, %c0_i32_0 : i32, i32
  }
  func.func @transform_3(%arg0: i32) -> (i32, i32) {
    %c0_i32 = arith.constant 0 : i32
    %c0_i32_0 = arith.constant 0 : i32
    %c0_i32_1 = arith.constant 0 : i32
    return %c0_i32, %c0_i32_0 : i32, i32
  }
}

module attributes {stable_mosaic.version = 11 : i64} {
  func.func @_layer_kernel(%arg0: i32, %arg1: memref<1x8x32xf32, #tpu.memory_space<vmem>>, %arg2: memref<1x1x8xf32, #tpu.memory_space<vmem>>, %arg3: memref<32x96xf32, #tpu.memory_space<vmem>>, %arg4: memref<1x96xf32, #tpu.memory_space<vmem>>, %arg5: memref<32x32xf32, #tpu.memory_space<vmem>>, %arg6: memref<1x32xf32, #tpu.memory_space<vmem>>, %arg7: memref<1x32xf32, #tpu.memory_space<vmem>>, %arg8: memref<1x32xf32, #tpu.memory_space<vmem>>, %arg9: memref<32x64xf32, #tpu.memory_space<vmem>>, %arg10: memref<1x64xf32, #tpu.memory_space<vmem>>, %arg11: memref<64x32xf32, #tpu.memory_space<vmem>>, %arg12: memref<1x32xf32, #tpu.memory_space<vmem>>, %arg13: memref<1x32xf32, #tpu.memory_space<vmem>>, %arg14: memref<1x32xf32, #tpu.memory_space<vmem>>, %arg15: memref<1x8x32xf32, #tpu.memory_space<vmem>>) attributes {dimension_semantics = [#tpu.dimension_semantics<parallel>], iteration_bounds = array<i64: 2>, scalar_prefetch = 0 : i64, scratch_operands = 0 : i64, tpu.core_type = #tpu.core_type<tc>, window_params = [{transform_indices = @transform_0, window_bounds = array<i64: 1, 8, 32>}, {transform_indices = @transform_1, window_bounds = array<i64: 1, 1, 8>}, {pipeline_mode = #tpu.pipeline_mode<synchronous>, transform_indices = @transform_2, window_bounds = array<i64: 32, 96>}, {pipeline_mode = #tpu.pipeline_mode<synchronous>, transform_indices = @transform_3, window_bounds = array<i64: 1, 96>}, {pipeline_mode = #tpu.pipeline_mode<synchronous>, transform_indices = @transform_4, window_bounds = array<i64: 32, 32>}, {pipeline_mode = #tpu.pipeline_mode<synchronous>, transform_indices = @transform_5, window_bounds = array<i64: 1, 32>}, {pipeline_mode = #tpu.pipeline_mode<synchronous>, transform_indices = @transform_6, window_bounds = array<i64: 1, 32>}, {pipeline_mode = #tpu.pipeline_mode<synchronous>, transform_indices = @transform_7, window_bounds = array<i64: 1, 32>}, {pipeline_mode = #tpu.pipeline_mode<synchronous>, transform_indices = @transform_8, window_bounds = array<i64: 32, 64>}, {pipeline_mode = #tpu.pipeline_mode<synchronous>, transform_indices = @transform_9, window_bounds = array<i64: 1, 64>}, {pipeline_mode = #tpu.pipeline_mode<synchronous>, transform_indices = @transform_10, window_bounds = array<i64: 64, 32>}, {pipeline_mode = #tpu.pipeline_mode<synchronous>, transform_indices = @transform_11, window_bounds = array<i64: 1, 32>}, {pipeline_mode = #tpu.pipeline_mode<synchronous>, transform_indices = @transform_12, window_bounds = array<i64: 1, 32>}, {pipeline_mode = #tpu.pipeline_mode<synchronous>, transform_indices = @transform_13, window_bounds = array<i64: 1, 32>}, {transform_indices = @transform_14, window_bounds = array<i64: 1, 8, 32>}]} {
    %c0 = arith.constant 0 : index
    %c0_0 = arith.constant 0 : index
    %c0_1 = arith.constant 0 : index
    %0 = vector.load %arg1[%c0, %c0_0, %c0_1] : memref<1x8x32xf32, #tpu.memory_space<vmem>>, vector<1x8x32xf32>
    %1 = vector.shape_cast %0 : vector<1x8x32xf32> to vector<8x32xf32>
    %c0_2 = arith.constant 0 : index
    %c0_3 = arith.constant 0 : index
    %c0_4 = arith.constant 0 : index
    %2 = vector.load %arg2[%c0_2, %c0_3, %c0_4] : memref<1x1x8xf32, #tpu.memory_space<vmem>>, vector<1x1x8xf32>
    %3 = vector.shape_cast %2 : vector<1x1x8xf32> to vector<1x8xf32>
    %c0_5 = arith.constant 0 : index
    %c0_6 = arith.constant 0 : index
    %4 = vector.load %arg3[%c0_5, %c0_6] : memref<32x96xf32, #tpu.memory_space<vmem>>, vector<32x96xf32>
    %cst = arith.constant dense<0.000000e+00> : vector<8x96xf32>
    %5 = tpu.matmul %1, %4, %cst {dimension_numbers = #tpu.dot_dimension_numbers<[1], [0], [0], [1], [0, 0, 1, 1], [], []>} : vector<8x32xf32>, vector<32x96xf32>, vector<8x96xf32> -> vector<8x96xf32>
    %c0_7 = arith.constant 0 : index
    %c0_8 = arith.constant 0 : index
    %6 = vector.load %arg4[%c0_7, %c0_8] : memref<1x96xf32, #tpu.memory_space<vmem>>, vector<1x96xf32>
    %7 = vector.broadcast %6 : vector<1x96xf32> to vector<8x96xf32>
    %8 = arith.addf %5, %7 : vector<8x96xf32>
    %9 = vector.extract_strided_slice %8 {offsets = [0, 0], sizes = [8, 8], strides = [1, 1]} : vector<8x96xf32> to vector<8x8xf32>
    %10 = vector.extract_strided_slice %8 {offsets = [0, 32], sizes = [8, 8], strides = [1, 1]} : vector<8x96xf32> to vector<8x8xf32>
    %11 = vector.extract_strided_slice %8 {offsets = [0, 64], sizes = [8, 8], strides = [1, 1]} : vector<8x96xf32> to vector<8x8xf32>
    %cst_9 = arith.constant dense<0.000000e+00> : vector<8x8xf32>
    %12 = tpu.matmul %9, %10, %cst_9 {dimension_numbers = #tpu.dot_dimension_numbers<[1], [1], [0], [0], [0, 0, 1, 0], [], []>} : vector<8x8xf32>, vector<8x8xf32>, vector<8x8xf32> -> vector<8x8xf32>
    %cst_10 = arith.constant 0.353553385 : f32
    %13 = vector.broadcast %cst_10 : f32 to vector<8x8xf32>
    %14 = arith.mulf %12, %13 : vector<8x8xf32>
    %15 = vector.broadcast %3 : vector<1x8xf32> to vector<8x8xf32>
    %16 = arith.addf %14, %15 : vector<8x8xf32>
    %cst_11 = arith.constant dense<0xFF800000> : vector<8xf32>
    %17 = vector.multi_reduction <maximumf>, %16, %cst_11 [1] : vector<8x8xf32> to vector<8xf32>
    %18 = vector.shape_cast %17 : vector<8xf32> to vector<8x1xf32>
    %19 = vector.broadcast %18 : vector<8x1xf32> to vector<8x8xf32>
    %20 = arith.subf %16, %19 : vector<8x8xf32>
    %21 = math.exp %20 : vector<8x8xf32>
    %cst_12 = arith.constant dense<0.000000e+00> : vector<8xf32>
    %22 = vector.multi_reduction <add>, %21, %cst_12 [1] : vector<8x8xf32> to vector<8xf32>
    %23 = vector.shape_cast %22 : vector<8xf32> to vector<8x1xf32>
    %24 = tpu.reciprocal %23 {approx = true} : vector<8x1xf32> -> vector<8x1xf32>
    %25 = vector.broadcast %24 : vector<8x1xf32> to vector<8x8xf32>
    %26 = arith.mulf %21, %25 : vector<8x8xf32>
    %cst_13 = arith.constant dense<0.000000e+00> : vector<8x8xf32>
    %27 = tpu.matmul %26, %11, %cst_13 {dimension_numbers = #tpu.dot_dimension_numbers<[1], [0], [0], [1], [0, 0, 1, 1], [], []>} : vector<8x8xf32>, vector<8x8xf32>, vector<8x8xf32> -> vector<8x8xf32>
    %28 = vector.extract_strided_slice %8 {offsets = [0, 8], sizes = [8, 8], strides = [1, 1]} : vector<8x96xf32> to vector<8x8xf32>
    %29 = vector.extract_strided_slice %8 {offsets = [0, 40], sizes = [8, 8], strides = [1, 1]} : vector<8x96xf32> to vector<8x8xf32>
    %30 = vector.extract_strided_slice %8 {offsets = [0, 72], sizes = [8, 8], strides = [1, 1]} : vector<8x96xf32> to vector<8x8xf32>
    %cst_14 = arith.constant dense<0.000000e+00> : vector<8x8xf32>
    %31 = tpu.matmul %28, %29, %cst_14 {dimension_numbers = #tpu.dot_dimension_numbers<[1], [1], [0], [0], [0, 0, 1, 0], [], []>} : vector<8x8xf32>, vector<8x8xf32>, vector<8x8xf32> -> vector<8x8xf32>
    %cst_15 = arith.constant 0.353553385 : f32
    %32 = vector.broadcast %cst_15 : f32 to vector<8x8xf32>
    %33 = arith.mulf %31, %32 : vector<8x8xf32>
    %34 = vector.broadcast %3 : vector<1x8xf32> to vector<8x8xf32>
    %35 = arith.addf %33, %34 : vector<8x8xf32>
    %cst_16 = arith.constant dense<0xFF800000> : vector<8xf32>
    %36 = vector.multi_reduction <maximumf>, %35, %cst_16 [1] : vector<8x8xf32> to vector<8xf32>
    %37 = vector.shape_cast %36 : vector<8xf32> to vector<8x1xf32>
    %38 = vector.broadcast %37 : vector<8x1xf32> to vector<8x8xf32>
    %39 = arith.subf %35, %38 : vector<8x8xf32>
    %40 = math.exp %39 : vector<8x8xf32>
    %cst_17 = arith.constant dense<0.000000e+00> : vector<8xf32>
    %41 = vector.multi_reduction <add>, %40, %cst_17 [1] : vector<8x8xf32> to vector<8xf32>
    %42 = vector.shape_cast %41 : vector<8xf32> to vector<8x1xf32>
    %43 = tpu.reciprocal %42 {approx = true} : vector<8x1xf32> -> vector<8x1xf32>
    %44 = vector.broadcast %43 : vector<8x1xf32> to vector<8x8xf32>
    %45 = arith.mulf %40, %44 : vector<8x8xf32>
    %cst_18 = arith.constant dense<0.000000e+00> : vector<8x8xf32>
    %46 = tpu.matmul %45, %30, %cst_18 {dimension_numbers = #tpu.dot_dimension_numbers<[1], [0], [0], [1], [0, 0, 1, 1], [], []>} : vector<8x8xf32>, vector<8x8xf32>, vector<8x8xf32> -> vector<8x8xf32>
    %47 = vector.extract_strided_slice %8 {offsets = [0, 16], sizes = [8, 8], strides = [1, 1]} : vector<8x96xf32> to vector<8x8xf32>
    %48 = vector.extract_strided_slice %8 {offsets = [0, 48], sizes = [8, 8], strides = [1, 1]} : vector<8x96xf32> to vector<8x8xf32>
    %49 = vector.extract_strided_slice %8 {offsets = [0, 80], sizes = [8, 8], strides = [1, 1]} : vector<8x96xf32> to vector<8x8xf32>
    %cst_19 = arith.constant dense<0.000000e+00> : vector<8x8xf32>
    %50 = tpu.matmul %47, %48, %cst_19 {dimension_numbers = #tpu.dot_dimension_numbers<[1], [1], [0], [0], [0, 0, 1, 0], [], []>} : vector<8x8xf32>, vector<8x8xf32>, vector<8x8xf32> -> vector<8x8xf32>
    %cst_20 = arith.constant 0.353553385 : f32
    %51 = vector.broadcast %cst_20 : f32 to vector<8x8xf32>
    %52 = arith.mulf %50, %51 : vector<8x8xf32>
    %53 = vector.broadcast %3 : vector<1x8xf32> to vector<8x8xf32>
    %54 = arith.addf %52, %53 : vector<8x8xf32>
    %cst_21 = arith.constant dense<0xFF800000> : vector<8xf32>
    %55 = vector.multi_reduction <maximumf>, %54, %cst_21 [1] : vector<8x8xf32> to vector<8xf32>
    %56 = vector.shape_cast %55 : vector<8xf32> to vector<8x1xf32>
    %57 = vector.broadcast %56 : vector<8x1xf32> to vector<8x8xf32>
    %58 = arith.subf %54, %57 : vector<8x8xf32>
    %59 = math.exp %58 : vector<8x8xf32>
    %cst_22 = arith.constant dense<0.000000e+00> : vector<8xf32>
    %60 = vector.multi_reduction <add>, %59, %cst_22 [1] : vector<8x8xf32> to vector<8xf32>
    %61 = vector.shape_cast %60 : vector<8xf32> to vector<8x1xf32>
    %62 = tpu.reciprocal %61 {approx = true} : vector<8x1xf32> -> vector<8x1xf32>
    %63 = vector.broadcast %62 : vector<8x1xf32> to vector<8x8xf32>
    %64 = arith.mulf %59, %63 : vector<8x8xf32>
    %cst_23 = arith.constant dense<0.000000e+00> : vector<8x8xf32>
    %65 = tpu.matmul %64, %49, %cst_23 {dimension_numbers = #tpu.dot_dimension_numbers<[1], [0], [0], [1], [0, 0, 1, 1], [], []>} : vector<8x8xf32>, vector<8x8xf32>, vector<8x8xf32> -> vector<8x8xf32>
    %66 = vector.extract_strided_slice %8 {offsets = [0, 24], sizes = [8, 8], strides = [1, 1]} : vector<8x96xf32> to vector<8x8xf32>
    %67 = vector.extract_strided_slice %8 {offsets = [0, 56], sizes = [8, 8], strides = [1, 1]} : vector<8x96xf32> to vector<8x8xf32>
    %68 = vector.extract_strided_slice %8 {offsets = [0, 88], sizes = [8, 8], strides = [1, 1]} : vector<8x96xf32> to vector<8x8xf32>
    %cst_24 = arith.constant dense<0.000000e+00> : vector<8x8xf32>
    %69 = tpu.matmul %66, %67, %cst_24 {dimension_numbers = #tpu.dot_dimension_numbers<[1], [1], [0], [0], [0, 0, 1, 0], [], []>} : vector<8x8xf32>, vector<8x8xf32>, vector<8x8xf32> -> vector<8x8xf32>
    %cst_25 = arith.constant 0.353553385 : f32
    %70 = vector.broadcast %cst_25 : f32 to vector<8x8xf32>
    %71 = arith.mulf %69, %70 : vector<8x8xf32>
    %72 = vector.broadcast %3 : vector<1x8xf32> to vector<8x8xf32>
    %73 = arith.addf %71, %72 : vector<8x8xf32>
    %cst_26 = arith.constant dense<0xFF800000> : vector<8xf32>
    %74 = vector.multi_reduction <maximumf>, %73, %cst_26 [1] : vector<8x8xf32> to vector<8xf32>
    %75 = vector.shape_cast %74 : vector<8xf32> to vector<8x1xf32>
    %76 = vector.broadcast %75 : vector<8x1xf32> to vector<8x8xf32>
    %77 = arith.subf %73, %76 : vector<8x8xf32>
    %78 = math.exp %77 : vector<8x8xf32>
    %cst_27 = arith.constant dense<0.000000e+00> : vector<8xf32>
    %79 = vector.multi_reduction <add>, %78, %cst_27 [1] : vector<8x8xf32> to vector<8xf32>
    %80 = vector.shape_cast %79 : vector<8xf32> to vector<8x1xf32>
    %81 = tpu.reciprocal %80 {approx = true} : vector<8x1xf32> -> vector<8x1xf32>
    %82 = vector.broadcast %81 : vector<8x1xf32> to vector<8x8xf32>
    %83 = arith.mulf %78, %82 : vector<8x8xf32>
    %cst_28 = arith.constant dense<0.000000e+00> : vector<8x8xf32>
    %84 = tpu.matmul %83, %68, %cst_28 {dimension_numbers = #tpu.dot_dimension_numbers<[1], [0], [0], [1], [0, 0, 1, 1], [], []>} : vector<8x8xf32>, vector<8x8xf32>, vector<8x8xf32> -> vector<8x8xf32>
    %85 = tpu.concatenate %27, %46, %65, %84 in 1 : vector<8x8xf32>, vector<8x8xf32>, vector<8x8xf32>, vector<8x8xf32> -> vector<8x32xf32>
    %c0_29 = arith.constant 0 : index
    %c0_30 = arith.constant 0 : index
    %86 = vector.load %arg5[%c0_29, %c0_30] : memref<32x32xf32, #tpu.memory_space<vmem>>, vector<32x32xf32>
    %cst_31 = arith.constant dense<0.000000e+00> : vector<8x32xf32>
    %87 = tpu.matmul %85, %86, %cst_31 {dimension_numbers = #tpu.dot_dimension_numbers<[1], [0], [0], [1], [0, 0, 1, 1], [], []>} : vector<8x32xf32>, vector<32x32xf32>, vector<8x32xf32> -> vector<8x32xf32>
    %c0_32 = arith.constant 0 : index
    %c0_33 = arith.constant 0 : index
    %88 = vector.load %arg6[%c0_32, %c0_33] : memref<1x32xf32, #tpu.memory_space<vmem>>, vector<1x32xf32>
    %89 = vector.broadcast %88 : vector<1x32xf32> to vector<8x32xf32>
    %90 = arith.addf %87, %89 : vector<8x32xf32>
    %91 = arith.addf %90, %1 : vector<8x32xf32>
    %c0_34 = arith.constant 0 : index
    %c0_35 = arith.constant 0 : index
    %92 = vector.load %arg7[%c0_34, %c0_35] : memref<1x32xf32, #tpu.memory_space<vmem>>, vector<1x32xf32>
    %c0_36 = arith.constant 0 : index
    %c0_37 = arith.constant 0 : index
    %93 = vector.load %arg8[%c0_36, %c0_37] : memref<1x32xf32, #tpu.memory_space<vmem>>, vector<1x32xf32>
    %cst_38 = arith.constant dense<0.000000e+00> : vector<8xf32>
    %94 = vector.multi_reduction <add>, %91, %cst_38 [1] : vector<8x32xf32> to vector<8xf32>
    %95 = vector.shape_cast %94 : vector<8xf32> to vector<8x1xf32>
    %cst_39 = arith.constant 3.200000e+01 : f32
    %96 = vector.broadcast %cst_39 : f32 to vector<8x1xf32>
    %97 = arith.divf %95, %96 : vector<8x1xf32>
    %98 = vector.broadcast %97 : vector<8x1xf32> to vector<8x32xf32>
    %99 = arith.subf %91, %98 : vector<8x32xf32>
    %100 = arith.mulf %99, %99 : vector<8x32xf32>
    %cst_40 = arith.constant dense<0.000000e+00> : vector<8xf32>
    %101 = vector.multi_reduction <add>, %100, %cst_40 [1] : vector<8x32xf32> to vector<8xf32>
    %102 = vector.shape_cast %101 : vector<8xf32> to vector<8x1xf32>
    %cst_41 = arith.constant 3.200000e+01 : f32
    %103 = vector.broadcast %cst_41 : f32 to vector<8x1xf32>
    %104 = arith.divf %102, %103 : vector<8x1xf32>
    %105 = vector.broadcast %97 : vector<8x1xf32> to vector<8x32xf32>
    %106 = arith.subf %91, %105 : vector<8x32xf32>
    %cst_42 = arith.constant 9.99999996E-13 : f32
    %107 = vector.broadcast %cst_42 : f32 to vector<8x1xf32>
    %108 = arith.addf %104, %107 : vector<8x1xf32>
    %109 = math.rsqrt %108 : vector<8x1xf32>
    %110 = vector.broadcast %109 : vector<8x1xf32> to vector<8x32xf32>
    %111 = arith.mulf %106, %110 : vector<8x32xf32>
    %112 = vector.broadcast %92 : vector<1x32xf32> to vector<8x32xf32>
    %113 = arith.mulf %111, %112 : vector<8x32xf32>
    %114 = vector.broadcast %93 : vector<1x32xf32> to vector<8x32xf32>
    %115 = arith.addf %113, %114 : vector<8x32xf32>
    %c0_43 = arith.constant 0 : index
    %c0_44 = arith.constant 0 : index
    %116 = vector.load %arg9[%c0_43, %c0_44] : memref<32x64xf32, #tpu.memory_space<vmem>>, vector<32x64xf32>
    %cst_45 = arith.constant dense<0.000000e+00> : vector<8x64xf32>
    %117 = tpu.matmul %115, %116, %cst_45 {dimension_numbers = #tpu.dot_dimension_numbers<[1], [0], [0], [1], [0, 0, 1, 1], [], []>} : vector<8x32xf32>, vector<32x64xf32>, vector<8x64xf32> -> vector<8x64xf32>
    %c0_46 = arith.constant 0 : index
    %c0_47 = arith.constant 0 : index
    %118 = vector.load %arg10[%c0_46, %c0_47] : memref<1x64xf32, #tpu.memory_space<vmem>>, vector<1x64xf32>
    %119 = vector.broadcast %118 : vector<1x64xf32> to vector<8x64xf32>
    %120 = arith.addf %117, %119 : vector<8x64xf32>
    %cst_48 = arith.constant 5.000000e-01 : f32
    %121 = vector.broadcast %cst_48 : f32 to vector<8x64xf32>
    %122 = arith.mulf %121, %120 : vector<8x64xf32>
    %cst_49 = arith.constant 0.707106769 : f32
    %123 = vector.broadcast %cst_49 : f32 to vector<8x64xf32>
    %124 = arith.mulf %120, %123 : vector<8x64xf32>
    %cst_50 = arith.constant 0.000000e+00 : f32
    %125 = vector.broadcast %cst_50 : f32 to vector<8x64xf32>
    %126 = arith.cmpf olt, %124, %125 : vector<8x64xf32>
    %cst_51 = arith.constant -1.000000e+00 : f32
    %cst_52 = arith.constant 1.000000e+00 : f32
    %127 = vector.broadcast %cst_51 : f32 to vector<8x64xf32>
    %128 = vector.broadcast %cst_52 : f32 to vector<8x64xf32>
    %129 = arith.select %126, %127, %128 : vector<8x64xi1>, vector<8x64xf32>
    %130 = math.absf %124 : vector<8x64xf32>
    %cst_53 = arith.constant 0.327591091 : f32
    %131 = vector.broadcast %cst_53 : f32 to vector<8x64xf32>
    %132 = arith.mulf %131, %130 : vector<8x64xf32>
    %cst_54 = arith.constant 1.000000e+00 : f32
    %133 = vector.broadcast %cst_54 : f32 to vector<8x64xf32>
    %134 = arith.addf %133, %132 : vector<8x64xf32>
    %cst_55 = arith.constant 1.000000e+00 : f32
    %135 = vector.broadcast %cst_55 : f32 to vector<8x64xf32>
    %136 = arith.divf %135, %134 : vector<8x64xf32>
    %cst_56 = arith.constant 1.06140542 : f32
    %137 = vector.broadcast %cst_56 : f32 to vector<8x64xf32>
    %138 = arith.mulf %137, %136 : vector<8x64xf32>
    %cst_57 = arith.constant -1.45315206 : f32
    %139 = vector.broadcast %cst_57 : f32 to vector<8x64xf32>
    %140 = arith.addf %138, %139 : vector<8x64xf32>
    %141 = arith.mulf %140, %136 : vector<8x64xf32>
    %cst_58 = arith.constant 1.42141378 : f32
    %142 = vector.broadcast %cst_58 : f32 to vector<8x64xf32>
    %143 = arith.addf %141, %142 : vector<8x64xf32>
    %144 = arith.mulf %143, %136 : vector<8x64xf32>
    %cst_59 = arith.constant -0.284496725 : f32
    %145 = vector.broadcast %cst_59 : f32 to vector<8x64xf32>
    %146 = arith.addf %144, %145 : vector<8x64xf32>
    %147 = arith.mulf %146, %136 : vector<8x64xf32>
    %cst_60 = arith.constant 0.254829586 : f32
    %148 = vector.broadcast %cst_60 : f32 to vector<8x64xf32>
    %149 = arith.addf %147, %148 : vector<8x64xf32>
    %150 = arith.mulf %149, %136 : vector<8x64xf32>
    %cst_61 = arith.constant 0.000000e+00 : f32
    %151 = vector.broadcast %cst_61 : f32 to vector<8x64xf32>
    %152 = arith.subf %151, %130 : vector<8x64xf32>
    %153 = arith.mulf %152, %130 : vector<8x64xf32>
    %154 = math.exp %153 : vector<8x64xf32>
    %155 = arith.mulf %150, %154 : vector<8x64xf32>
    %cst_62 = arith.constant 1.000000e+00 : f32
    %156 = vector.broadcast %cst_62 : f32 to vector<8x64xf32>
    %157 = arith.subf %156, %155 : vector<8x64xf32>
    %158 = arith.mulf %129, %157 : vector<8x64xf32>
    %cst_63 = arith.constant 1.000000e+00 : f32
    %159 = vector.broadcast %cst_63 : f32 to vector<8x64xf32>
    %160 = arith.addf %159, %158 : vector<8x64xf32>
    %161 = arith.mulf %122, %160 : vector<8x64xf32>
    %c0_64 = arith.constant 0 : index
    %c0_65 = arith.constant 0 : index
    %162 = vector.load %arg11[%c0_64, %c0_65] : memref<64x32xf32, #tpu.memory_space<vmem>>, vector<64x32xf32>
    %cst_66 = arith.constant dense<0.000000e+00> : vector<8x32xf32>
    %163 = tpu.matmul %161, %162, %cst_66 {dimension_numbers = #tpu.dot_dimension_numbers<[1], [0], [0], [1], [0, 0, 1, 1], [], []>} : vector<8x64xf32>, vector<64x32xf32>, vector<8x32xf32> -> vector<8x32xf32>
    %c0_67 = arith.constant 0 : index
    %c0_68 = arith.constant 0 : index
    %164 = vector.load %arg12[%c0_67, %c0_68] : memref<1x32xf32, #tpu.memory_space<vmem>>, vector<1x32xf32>
    %165 = vector.broadcast %164 : vector<1x32xf32> to vector<8x32xf32>
    %166 = arith.addf %163, %165 : vector<8x32xf32>
    %167 = arith.addf %166, %115 : vector<8x32xf32>
    %c0_69 = arith.constant 0 : index
    %c0_70 = arith.constant 0 : index
    %168 = vector.load %arg13[%c0_69, %c0_70] : memref<1x32xf32, #tpu.memory_space<vmem>>, vector<1x32xf32>
    %c0_71 = arith.constant 0 : index
    %c0_72 = arith.constant 0 : index
    %169 = vector.load %arg14[%c0_71, %c0_72] : memref<1x32xf32, #tpu.memory_space<vmem>>, vector<1x32xf32>
    %cst_73 = arith.constant dense<0.000000e+00> : vector<8xf32>
    %170 = vector.multi_reduction <add>, %167, %cst_73 [1] : vector<8x32xf32> to vector<8xf32>
    %171 = vector.shape_cast %170 : vector<8xf32> to vector<8x1xf32>
    %cst_74 = arith.constant 3.200000e+01 : f32
    %172 = vector.broadcast %cst_74 : f32 to vector<8x1xf32>
    %173 = arith.divf %171, %172 : vector<8x1xf32>
    %174 = vector.broadcast %173 : vector<8x1xf32> to vector<8x32xf32>
    %175 = arith.subf %167, %174 : vector<8x32xf32>
    %176 = arith.mulf %175, %175 : vector<8x32xf32>
    %cst_75 = arith.constant dense<0.000000e+00> : vector<8xf32>
    %177 = vector.multi_reduction <add>, %176, %cst_75 [1] : vector<8x32xf32> to vector<8xf32>
    %178 = vector.shape_cast %177 : vector<8xf32> to vector<8x1xf32>
    %cst_76 = arith.constant 3.200000e+01 : f32
    %179 = vector.broadcast %cst_76 : f32 to vector<8x1xf32>
    %180 = arith.divf %178, %179 : vector<8x1xf32>
    %181 = vector.broadcast %173 : vector<8x1xf32> to vector<8x32xf32>
    %182 = arith.subf %167, %181 : vector<8x32xf32>
    %cst_77 = arith.constant 9.99999996E-13 : f32
    %183 = vector.broadcast %cst_77 : f32 to vector<8x1xf32>
    %184 = arith.addf %180, %183 : vector<8x1xf32>
    %185 = math.rsqrt %184 : vector<8x1xf32>
    %186 = vector.broadcast %185 : vector<8x1xf32> to vector<8x32xf32>
    %187 = arith.mulf %182, %186 : vector<8x32xf32>
    %188 = vector.broadcast %168 : vector<1x32xf32> to vector<8x32xf32>
    %189 = arith.mulf %187, %188 : vector<8x32xf32>
    %190 = vector.broadcast %169 : vector<1x32xf32> to vector<8x32xf32>
    %191 = arith.addf %189, %190 : vector<8x32xf32>
    %c0_78 = arith.constant 0 : index
    %c0_79 = arith.constant 0 : index
    %c0_80 = arith.constant 0 : index
    %192 = vector.load %arg15[%c0_78, %c0_79, %c0_80] : memref<1x8x32xf32, #tpu.memory_space<vmem>>, vector<1x8x32xf32>
    %193 = vector.shape_cast %192 : vector<1x8x32xf32> to vector<8x32xf32>
    %194 = vector.shape_cast %191 : vector<8x32xf32> to vector<1x8x32xf32>
    tpu.vector_store %arg15[%c0_78, %c0_79, %c0_80], %194 {strides = array<i32>} : memref<1x8x32xf32, #tpu.memory_space<vmem>>, vector<1x8x32xf32>,
    return
  }
  func.func @transform_0(%arg0: i32) -> (i32, i32, i32) {
    %c0_i32 = arith.constant 0 : i32
    %c0_i32_0 = arith.constant 0 : i32
    %c0_i32_1 = arith.constant 0 : i32
    return %arg0, %c0_i32, %c0_i32_0 : i32, i32, i32
  }
  func.func @transform_1(%arg0: i32) -> (i32, i32, i32) {
    %c0_i32 = arith.constant 0 : i32
    %c0_i32_0 = arith.constant 0 : i32
    %c0_i32_1 = arith.constant 0 : i32
    return %arg0, %c0_i32, %c0_i32_0 : i32, i32, i32
  }
  func.func @transform_2(%arg0: i32) -> (i32, i32) {
    %c0_i32 = arith.constant 0 : i32
    %c0_i32_0 = arith.constant 0 : i32
    %c0_i32_1 = arith.constant 0 : i32
    return %c0_i32, %c0_i32_0 : i32, i32
  }
  func.func @transform_3(%arg0: i32) -> (i32, i32) {
    %c0_i32 = arith.constant 0 : i32
    %c0_i32_0 = arith.constant 0 : i32
    %c0_i32_1 = arith.constant 0 : i32
    return %c0_i32, %c0_i32_0 : i32, i32
  }
  func.func @transform_4(%arg0: i32) -> (i32, i32) {
    %c0_i32 = arith.constant 0 : i32
    %c0_i32_0 = arith.constant 0 : i32
    %c0_i32_1 = arith.constant 0 : i32
    return %c0_i32, %c0_i32_0 : i32, i32
  }
  func.func @transform_5(%arg0: i32) -> (i32, i32) {
    %c0_i32 = arith.constant 0 : i32
    %c0_i32_0 = arith.constant 0 : i32
    %c0_i32_1 = arith.constant 0 : i32
    return %c0_i32, %c0_i32_0 : i32, i32
  }
  func.func @transform_6(%arg0: i32) -> (i32, i32) {
    %c0_i32 = arith.constant 0 : i32
    %c0_i32_0 = arith.constant 0 : i32
    %c0_i32_1 = arith.constant 0 : i32
    return %c0_i32, %c0_i32_0 : i32, i32
  }
  func.func @transform_7(%arg0: i32) -> (i32, i32) {
    %c0_i32 = arith.constant 0 : i32
    %c0_i32_0 = arith.constant 0 : i32
    %c0_i32_1 = arith.constant 0 : i32
    return %c0_i32, %c0_i32_0 : i32, i32
  }
  func.func @transform_8(%arg0: i32) -> (i32, i32) {
    %c0_i32 = arith.constant 0 : i32
    %c0_i32_0 = arith.constant 0 : i32
    %c0_i32_1 = arith.constant 0 : i32
    return %c0_i32, %c0_i32_0 : i32, i32
  }
  func.func @transform_9(%arg0: i32) -> (i32, i32) {
    %c0_i32 = arith.constant 0 : i32
    %c0_i32_0 = arith.constant 0 : i32
    %c0_i32_1 = arith.constant 0 : i32
    return %c0_i32, %c0_i32_0 : i32, i32
  }
  func.func @transform_10(%arg0: i32) -> (i32, i32) {
    %c0_i32 = arith.constant 0 : i32
    %c0_i32_0 = arith.constant 0 : i32
    %c0_i32_1 = arith.constant 0 : i32
    return %c0_i32, %c0_i32_0 : i32, i32
  }
  func.func @transform_11(%arg0: i32) -> (i32, i32) {
    %c0_i32 = arith.constant 0 : i32
    %c0_i32_0 = arith.constant 0 : i32
    %c0_i32_1 = arith.constant 0 : i32
    return %c0_i32, %c0_i32_0 : i32, i32
  }
  func.func @transform_12(%arg0: i32) -> (i32, i32) {
    %c0_i32 = arith.constant 0 : i32
    %c0_i32_0 = arith.constant 0 : i32
    %c0_i32_1 = arith.constant 0 : i32
    return %c0_i32, %c0_i32_0 : i32, i32
  }
  func.func @transform_13(%arg0: i32) -> (i32, i32) {
    %c0_i32 = arith.constant 0 : i32
    %c0_i32_0 = arith.constant 0 : i32
    %c0_i32_1 = arith.constant 0 : i32
    return %c0_i32, %c0_i32_0 : i32, i32
  }
  func.func @transform_14(%arg0: i32) -> (i32, i32, i32) {
    %c0_i32 = arith.constant 0 : i32
    %c0_i32_0 = arith.constant 0 : i32
    %c0_i32_1 = arith.constant 0 : i32
    return %arg0, %c0_i32, %c0_i32_0 : i32, i32, i32
  }
}

module attributes {stable_mosaic.version = 11 : i64} {
  func.func @_heads_kernel(%arg0: i32, %arg1: memref<16x32xf32, #tpu.memory_space<vmem>>, %arg2: memref<2x32xf32, #tpu.memory_space<vmem>>, %arg3: memref<32x32xf32, #tpu.memory_space<vmem>>, %arg4: memref<1x32xf32, #tpu.memory_space<vmem>>, %arg5: memref<1x32xf32, #tpu.memory_space<vmem>>, %arg6: memref<1x32xf32, #tpu.memory_space<vmem>>, %arg7: memref<64x32xf32, #tpu.memory_space<vmem>>, %arg8: memref<1x64xf32, #tpu.memory_space<vmem>>, %arg9: memref<32x32xf32, #tpu.memory_space<vmem>>, %arg10: memref<1x32xf32, #tpu.memory_space<vmem>>, %arg11: memref<32x2xf32, #tpu.memory_space<vmem>>, %arg12: memref<1x2xf32, #tpu.memory_space<vmem>>, %arg13: memref<16x64xf32, #tpu.memory_space<vmem>>, %arg14: memref<2x2xf32, #tpu.memory_space<vmem>>) attributes {dimension_semantics = [#tpu.dimension_semantics<arbitrary>], iteration_bounds = array<i64: 1>, scalar_prefetch = 0 : i64, scratch_operands = 0 : i64, tpu.core_type = #tpu.core_type<tc>, window_params = [{pipeline_mode = #tpu.pipeline_mode<synchronous>, transform_indices = @transform_0, window_bounds = array<i64: 16, 32>}, {pipeline_mode = #tpu.pipeline_mode<synchronous>, transform_indices = @transform_1, window_bounds = array<i64: 2, 32>}, {pipeline_mode = #tpu.pipeline_mode<synchronous>, transform_indices = @transform_2, window_bounds = array<i64: 32, 32>}, {pipeline_mode = #tpu.pipeline_mode<synchronous>, transform_indices = @transform_3, window_bounds = array<i64: 1, 32>}, {pipeline_mode = #tpu.pipeline_mode<synchronous>, transform_indices = @transform_4, window_bounds = array<i64: 1, 32>}, {pipeline_mode = #tpu.pipeline_mode<synchronous>, transform_indices = @transform_5, window_bounds = array<i64: 1, 32>}, {pipeline_mode = #tpu.pipeline_mode<synchronous>, transform_indices = @transform_6, window_bounds = array<i64: 64, 32>}, {pipeline_mode = #tpu.pipeline_mode<synchronous>, transform_indices = @transform_7, window_bounds = array<i64: 1, 64>}, {pipeline_mode = #tpu.pipeline_mode<synchronous>, transform_indices = @transform_8, window_bounds = array<i64: 32, 32>}, {pipeline_mode = #tpu.pipeline_mode<synchronous>, transform_indices = @transform_9, window_bounds = array<i64: 1, 32>}, {pipeline_mode = #tpu.pipeline_mode<synchronous>, transform_indices = @transform_10, window_bounds = array<i64: 32, 2>}, {pipeline_mode = #tpu.pipeline_mode<synchronous>, transform_indices = @transform_11, window_bounds = array<i64: 1, 2>}, {pipeline_mode = #tpu.pipeline_mode<synchronous>, transform_indices = @transform_12, window_bounds = array<i64: 16, 64>}, {pipeline_mode = #tpu.pipeline_mode<synchronous>, transform_indices = @transform_13, window_bounds = array<i64: 2, 2>}]} {
    %c0 = arith.constant 0 : index
    %c0_0 = arith.constant 0 : index
    %0 = vector.load %arg1[%c0, %c0_0] : memref<16x32xf32, #tpu.memory_space<vmem>>, vector<16x32xf32>
    %c0_1 = arith.constant 0 : index
    %c0_2 = arith.constant 0 : index
    %1 = vector.load %arg3[%c0_1, %c0_2] : memref<32x32xf32, #tpu.memory_space<vmem>>, vector<32x32xf32>
    %cst = arith.constant dense<0.000000e+00> : vector<16x32xf32>
    %2 = tpu.matmul %0, %1, %cst {dimension_numbers = #tpu.dot_dimension_numbers<[1], [0], [0], [1], [0, 0, 1, 1], [], []>} : vector<16x32xf32>, vector<32x32xf32>, vector<16x32xf32> -> vector<16x32xf32>
    %c0_3 = arith.constant 0 : index
    %c0_4 = arith.constant 0 : index
    %3 = vector.load %arg4[%c0_3, %c0_4] : memref<1x32xf32, #tpu.memory_space<vmem>>, vector<1x32xf32>
    %4 = vector.broadcast %3 : vector<1x32xf32> to vector<16x32xf32>
    %5 = arith.addf %2, %4 : vector<16x32xf32>
    %cst_5 = arith.constant 5.000000e-01 : f32
    %6 = vector.broadcast %cst_5 : f32 to vector<16x32xf32>
    %7 = arith.mulf %6, %5 : vector<16x32xf32>
    %cst_6 = arith.constant 0.707106769 : f32
    %8 = vector.broadcast %cst_6 : f32 to vector<16x32xf32>
    %9 = arith.mulf %5, %8 : vector<16x32xf32>
    %cst_7 = arith.constant 0.000000e+00 : f32
    %10 = vector.broadcast %cst_7 : f32 to vector<16x32xf32>
    %11 = arith.cmpf olt, %9, %10 : vector<16x32xf32>
    %cst_8 = arith.constant -1.000000e+00 : f32
    %cst_9 = arith.constant 1.000000e+00 : f32
    %12 = vector.broadcast %cst_8 : f32 to vector<16x32xf32>
    %13 = vector.broadcast %cst_9 : f32 to vector<16x32xf32>
    %14 = arith.select %11, %12, %13 : vector<16x32xi1>, vector<16x32xf32>
    %15 = math.absf %9 : vector<16x32xf32>
    %cst_10 = arith.constant 0.327591091 : f32
    %16 = vector.broadcast %cst_10 : f32 to vector<16x32xf32>
    %17 = arith.mulf %16, %15 : vector<16x32xf32>
    %cst_11 = arith.constant 1.000000e+00 : f32
    %18 = vector.broadcast %cst_11 : f32 to vector<16x32xf32>
    %19 = arith.addf %18, %17 : vector<16x32xf32>
    %cst_12 = arith.constant 1.000000e+00 : f32
    %20 = vector.broadcast %cst_12 : f32 to vector<16x32xf32>
    %21 = arith.divf %20, %19 : vector<16x32xf32>
    %cst_13 = arith.constant 1.06140542 : f32
    %22 = vector.broadcast %cst_13 : f32 to vector<16x32xf32>
    %23 = arith.mulf %22, %21 : vector<16x32xf32>
    %cst_14 = arith.constant -1.45315206 : f32
    %24 = vector.broadcast %cst_14 : f32 to vector<16x32xf32>
    %25 = arith.addf %23, %24 : vector<16x32xf32>
    %26 = arith.mulf %25, %21 : vector<16x32xf32>
    %cst_15 = arith.constant 1.42141378 : f32
    %27 = vector.broadcast %cst_15 : f32 to vector<16x32xf32>
    %28 = arith.addf %26, %27 : vector<16x32xf32>
    %29 = arith.mulf %28, %21 : vector<16x32xf32>
    %cst_16 = arith.constant -0.284496725 : f32
    %30 = vector.broadcast %cst_16 : f32 to vector<16x32xf32>
    %31 = arith.addf %29, %30 : vector<16x32xf32>
    %32 = arith.mulf %31, %21 : vector<16x32xf32>
    %cst_17 = arith.constant 0.254829586 : f32
    %33 = vector.broadcast %cst_17 : f32 to vector<16x32xf32>
    %34 = arith.addf %32, %33 : vector<16x32xf32>
    %35 = arith.mulf %34, %21 : vector<16x32xf32>
    %cst_18 = arith.constant 0.000000e+00 : f32
    %36 = vector.broadcast %cst_18 : f32 to vector<16x32xf32>
    %37 = arith.subf %36, %15 : vector<16x32xf32>
    %38 = arith.mulf %37, %15 : vector<16x32xf32>
    %39 = math.exp %38 : vector<16x32xf32>
    %40 = arith.mulf %35, %39 : vector<16x32xf32>
    %cst_19 = arith.constant 1.000000e+00 : f32
    %41 = vector.broadcast %cst_19 : f32 to vector<16x32xf32>
    %42 = arith.subf %41, %40 : vector<16x32xf32>
    %43 = arith.mulf %14, %42 : vector<16x32xf32>
    %cst_20 = arith.constant 1.000000e+00 : f32
    %44 = vector.broadcast %cst_20 : f32 to vector<16x32xf32>
    %45 = arith.addf %44, %43 : vector<16x32xf32>
    %46 = arith.mulf %7, %45 : vector<16x32xf32>
    %c0_21 = arith.constant 0 : index
    %c0_22 = arith.constant 0 : index
    %47 = vector.load %arg5[%c0_21, %c0_22] : memref<1x32xf32, #tpu.memory_space<vmem>>, vector<1x32xf32>
    %c0_23 = arith.constant 0 : index
    %c0_24 = arith.constant 0 : index
    %48 = vector.load %arg6[%c0_23, %c0_24] : memref<1x32xf32, #tpu.memory_space<vmem>>, vector<1x32xf32>
    %cst_25 = arith.constant dense<0.000000e+00> : vector<16xf32>
    %49 = vector.multi_reduction <add>, %46, %cst_25 [1] : vector<16x32xf32> to vector<16xf32>
    %50 = vector.shape_cast %49 : vector<16xf32> to vector<16x1xf32>
    %cst_26 = arith.constant 3.200000e+01 : f32
    %51 = vector.broadcast %cst_26 : f32 to vector<16x1xf32>
    %52 = arith.divf %50, %51 : vector<16x1xf32>
    %53 = vector.broadcast %52 : vector<16x1xf32> to vector<16x32xf32>
    %54 = arith.subf %46, %53 : vector<16x32xf32>
    %55 = arith.mulf %54, %54 : vector<16x32xf32>
    %cst_27 = arith.constant dense<0.000000e+00> : vector<16xf32>
    %56 = vector.multi_reduction <add>, %55, %cst_27 [1] : vector<16x32xf32> to vector<16xf32>
    %57 = vector.shape_cast %56 : vector<16xf32> to vector<16x1xf32>
    %cst_28 = arith.constant 3.200000e+01 : f32
    %58 = vector.broadcast %cst_28 : f32 to vector<16x1xf32>
    %59 = arith.divf %57, %58 : vector<16x1xf32>
    %60 = vector.broadcast %52 : vector<16x1xf32> to vector<16x32xf32>
    %61 = arith.subf %46, %60 : vector<16x32xf32>
    %cst_29 = arith.constant 9.99999996E-13 : f32
    %62 = vector.broadcast %cst_29 : f32 to vector<16x1xf32>
    %63 = arith.addf %59, %62 : vector<16x1xf32>
    %64 = math.rsqrt %63 : vector<16x1xf32>
    %65 = vector.broadcast %64 : vector<16x1xf32> to vector<16x32xf32>
    %66 = arith.mulf %61, %65 : vector<16x32xf32>
    %67 = vector.broadcast %47 : vector<1x32xf32> to vector<16x32xf32>
    %68 = arith.mulf %66, %67 : vector<16x32xf32>
    %69 = vector.broadcast %48 : vector<1x32xf32> to vector<16x32xf32>
    %70 = arith.addf %68, %69 : vector<16x32xf32>
    %c0_30 = arith.constant 0 : index
    %c0_31 = arith.constant 0 : index
    %71 = vector.load %arg7[%c0_30, %c0_31] : memref<64x32xf32, #tpu.memory_space<vmem>>, vector<64x32xf32>
    %cst_32 = arith.constant dense<0.000000e+00> : vector<16x64xf32>
    %72 = tpu.matmul %70, %71, %cst_32 {dimension_numbers = #tpu.dot_dimension_numbers<[1], [1], [0], [0], [0, 0, 1, 0], [], []>} : vector<16x32xf32>, vector<64x32xf32>, vector<16x64xf32> -> vector<16x64xf32>
    %c0_33 = arith.constant 0 : index
    %c0_34 = arith.constant 0 : index
    %73 = vector.load %arg8[%c0_33, %c0_34] : memref<1x64xf32, #tpu.memory_space<vmem>>, vector<1x64xf32>
    %74 = vector.broadcast %73 : vector<1x64xf32> to vector<16x64xf32>
    %75 = arith.addf %72, %74 : vector<16x64xf32>
    %c0_35 = arith.constant 0 : index
    %c0_36 = arith.constant 0 : index
    %76 = vector.load %arg13[%c0_35, %c0_36] : memref<16x64xf32, #tpu.memory_space<vmem>>, vector<16x64xf32>
    tpu.vector_store %arg13[%c0_35, %c0_36], %75 {strides = array<i32>} : memref<16x64xf32, #tpu.memory_space<vmem>>, vector<16x64xf32>,
    %c0_37 = arith.constant 0 : index
    %c0_38 = arith.constant 0 : index
    %77 = vector.load %arg2[%c0_37, %c0_38] : memref<2x32xf32, #tpu.memory_space<vmem>>, vector<2x32xf32>
    %c0_39 = arith.constant 0 : index
    %c0_40 = arith.constant 0 : index
    %78 = vector.load %arg9[%c0_39, %c0_40] : memref<32x32xf32, #tpu.memory_space<vmem>>, vector<32x32xf32>
    %cst_41 = arith.constant dense<0.000000e+00> : vector<2x32xf32>
    %79 = tpu.matmul %77, %78, %cst_41 {dimension_numbers = #tpu.dot_dimension_numbers<[1], [0], [0], [1], [0, 0, 1, 1], [], []>} : vector<2x32xf32>, vector<32x32xf32>, vector<2x32xf32> -> vector<2x32xf32>
    %c0_42 = arith.constant 0 : index
    %c0_43 = arith.constant 0 : index
    %80 = vector.load %arg10[%c0_42, %c0_43] : memref<1x32xf32, #tpu.memory_space<vmem>>, vector<1x32xf32>
    %81 = vector.broadcast %80 : vector<1x32xf32> to vector<2x32xf32>
    %82 = arith.addf %79, %81 : vector<2x32xf32>
    %83 = math.tanh %82 : vector<2x32xf32>
    %c0_44 = arith.constant 0 : index
    %c0_45 = arith.constant 0 : index
    %84 = vector.load %arg11[%c0_44, %c0_45] : memref<32x2xf32, #tpu.memory_space<vmem>>, vector<32x2xf32>
    %cst_46 = arith.constant dense<0.000000e+00> : vector<2x2xf32>
    %85 = tpu.matmul %83, %84, %cst_46 {dimension_numbers = #tpu.dot_dimension_numbers<[1], [0], [0], [1], [0, 0, 1, 1], [], []>} : vector<2x32xf32>, vector<32x2xf32>, vector<2x2xf32> -> vector<2x2xf32>
    %c0_47 = arith.constant 0 : index
    %c0_48 = arith.constant 0 : index
    %86 = vector.load %arg12[%c0_47, %c0_48] : memref<1x2xf32, #tpu.memory_space<vmem>>, vector<1x2xf32>
    %87 = vector.broadcast %86 : vector<1x2xf32> to vector<2x2xf32>
    %88 = arith.addf %85, %87 : vector<2x2xf32>
    %c0_49 = arith.constant 0 : index
    %c0_50 = arith.constant 0 : index
    %89 = vector.load %arg14[%c0_49, %c0_50] : memref<2x2xf32, #tpu.memory_space<vmem>>, vector<2x2xf32>
    tpu.vector_store %arg14[%c0_49, %c0_50], %88 {strides = array<i32>} : memref<2x2xf32, #tpu.memory_space<vmem>>, vector<2x2xf32>,
    return
  }
  func.func @transform_0(%arg0: i32) -> (i32, i32) {
    %c0_i32 = arith.constant 0 : i32
    %c0_i32_0 = arith.constant 0 : i32
    %c0_i32_1 = arith.constant 0 : i32
    return %c0_i32, %c0_i32_0 : i32, i32
  }
  func.func @transform_1(%arg0: i32) -> (i32, i32) {
    %c0_i32 = arith.constant 0 : i32
    %c0_i32_0 = arith.constant 0 : i32
    %c0_i32_1 = arith.constant 0 : i32
    return %c0_i32, %c0_i32_0 : i32, i32
  }
  func.func @transform_2(%arg0: i32) -> (i32, i32) {
    %c0_i32 = arith.constant 0 : i32
    %c0_i32_0 = arith.constant 0 : i32
    %c0_i32_1 = arith.constant 0 : i32
    return %c0_i32, %c0_i32_0 : i32, i32
  }
  func.func @transform_3(%arg0: i32) -> (i32, i32) {
    %c0_i32 = arith.constant 0 : i32
    %c0_i32_0 = arith.constant 0 : i32
    %c0_i32_1 = arith.constant 0 : i32
    return %c0_i32, %c0_i32_0 : i32, i32
  }
  func.func @transform_4(%arg0: i32) -> (i32, i32) {
    %c0_i32 = arith.constant 0 : i32
    %c0_i32_0 = arith.constant 0 : i32
    %c0_i32_1 = arith.constant 0 : i32
    return %c0_i32, %c0_i32_0 : i32, i32
  }
  func.func @transform_5(%arg0: i32) -> (i32, i32) {
    %c0_i32 = arith.constant 0 : i32
    %c0_i32_0 = arith.constant 0 : i32
    %c0_i32_1 = arith.constant 0 : i32
    return %c0_i32, %c0_i32_0 : i32, i32
  }
  func.func @transform_6(%arg0: i32) -> (i32, i32) {
    %c0_i32 = arith.constant 0 : i32
    %c0_i32_0 = arith.constant 0 : i32
    %c0_i32_1 = arith.constant 0 : i32
    return %c0_i32, %c0_i32_0 : i32, i32
  }
  func.func @transform_7(%arg0: i32) -> (i32, i32) {
    %c0_i32 = arith.constant 0 : i32
    %c0_i32_0 = arith.constant 0 : i32
    %c0_i32_1 = arith.constant 0 : i32
    return %c0_i32, %c0_i32_0 : i32, i32
  }
  func.func @transform_8(%arg0: i32) -> (i32, i32) {
    %c0_i32 = arith.constant 0 : i32
    %c0_i32_0 = arith.constant 0 : i32
    %c0_i32_1 = arith.constant 0 : i32
    return %c0_i32, %c0_i32_0 : i32, i32
  }
  func.func @transform_9(%arg0: i32) -> (i32, i32) {
    %c0_i32 = arith.constant 0 : i32
    %c0_i32_0 = arith.constant 0 : i32
    %c0_i32_1 = arith.constant 0 : i32
    return %c0_i32, %c0_i32_0 : i32, i32
  }
  func.func @transform_10(%arg0: i32) -> (i32, i32) {
    %c0_i32 = arith.constant 0 : i32
    %c0_i32_0 = arith.constant 0 : i32
    %c0_i32_1 = arith.constant 0 : i32
    return %c0_i32, %c0_i32_0 : i32, i32
  }
  func.func @transform_11(%arg0: i32) -> (i32, i32) {
    %c0_i32 = arith.constant 0 : i32
    %c0_i32_0 = arith.constant 0 : i32
    %c0_i32_1 = arith.constant 0 : i32
    return %c0_i32, %c0_i32_0 : i32, i32
  }
  func.func @transform_12(%arg0: i32) -> (i32, i32) {
    %c0_i32 = arith.constant 0 : i32
    %c0_i32_0 = arith.constant 0 : i32
    %c0_i32_1 = arith.constant 0 : i32
    return %c0_i32, %c0_i32_0 : i32, i32
  }
  func.func @transform_13(%arg0: i32) -> (i32, i32) {
    %c0_i32 = arith.constant 0 : i32
    %c0_i32_0 = arith.constant 0 : i32
    %c0_i32_1 = arith.constant 0 : i32
    return %c0_i32, %c0_i32_0 : i32, i32
  }
}

</mosaic_0001>

<bundles_post_ra>
// kernel: prebert_forward.4
= control target key start
LH: loop header
LB: loop body
LE: loop exit
PB: predicated region body
PF: predicated region fallthrough
CT: control target
= control target key end

     0   :  { %vm18_vm0 = vcmask 261120   ;;  %s118_s0 = inlined_call_operand.vmem [shape: f32[16,32], index: 0, kind: input, shape index: {}]   ;;  %s119_s1 = inlined_call_operand.vmem [shape: f32[1,32], index: 1, kind: input, shape index: {}]   ;;  %s120_s2 = inlined_call_operand.vmem [shape: f32[1,32], index: 2, kind: input, shape index: {}]   ;;  %s121_s3 = inlined_call_operand.vmem [shape: f32[16,32], index: 3, kind: output, shape index: {}]  }
   0x1   :  { %v14_v0 = vld [vmem:[%s118_s0] sm:$0xff]  ;;  %v15_v1 = vld [vmem:[%s118_s0 + $0x8] sm:$0xff] }
   0x2   :  { %v19_v2 = vsel %vm18_vm0, %v14_v0, 0.0  ;;  %v22_v3 = vsel %vm18_vm0, %v15_v1, 0.0  ;;  %v68_v21 = vld [vmem:[%s119_s1] ss:$0 sm:$0xff] }
   0x3   :  { %20 = vadd.xlane.f32.xlu0 %v19_v2  ;;  %v69_v23 = vld [vmem:[%s120_s2] ss:$0 sm:$0xff] }
   0x7   :  { %23 = vadd.xlane.f32.xlu0 %v22_v3 }
  0x8c   :  { %v21_v4 = vpop.xlane.xlu0 %20 }
  0x8d   :  { %v26_v5 = vmul.f32 0.03125, %v21_v4 }
  0x8f   :  { %v28_v6 = vsub.f32 %v14_v0, %v26_v5 }
  0x90   :  { %v24_v7 = vpop.xlane.xlu0 %23 }
  0x91   :  { %v27_v8 = vmul.f32 0.03125, %v24_v7  ;;  %v30_v9 = vmul.f32 %v28_v6, %v28_v6 }
  0x93   :  { %v29_v10 = vsub.f32 %v15_v1, %v27_v8  ;;  %v32_v11 = vsel %vm18_vm0, %v30_v9, 0.0 }
  0x94   :  { %33 = vadd.xlane.f32.xlu1 %v32_v11 }
  0x95   :  { %v31_v12 = vmul.f32 %v29_v10, %v29_v10 }
  0x97   :  { %v35_v13 = vsel %vm18_vm0, %v31_v12, 0.0 }
  0x98   :  { %36 = vadd.xlane.f32.xlu1 %v35_v13 }
 0x11d   :  { %v34_v14 = vpop.xlane.xlu1 %33 }
 0x11e   :  { %v38_v15 = vmul.f32 0.03125, %v34_v14 }
 0x120   :  { %v40_v16 = vadd.f32 1e-12, %v38_v15 }
 0x121   :  { %v37_v17 = vpop.xlane.xlu1 %36 }
 0x122   :  { %70 = vrsqrt.f32 %v40_v16  ;;  %v39_v18 = vmul.f32 0.03125, %v37_v17 }
 0x124   :  { %v41_v19 = vadd.f32 1e-12, %v39_v18 }
 0x126   :  { %72 = vrsqrt.f32 %v41_v19 }
 0x12f   :  { %v71_v20 = vpop.eup %70 }
 0x130   :  { %v44_v22 = vmul.f32 %v71_v20, %v28_v6 }
 0x132   :  { %v52_v24 = vmul.f32 %v68_v21, %v44_v22 }
 0x133   :  { %v73_v25 = vpop.eup %72 }
 0x134   :  { %v60_v26 = vadd.f32 %v69_v23, %v52_v24  ;;  %v45_v27 = vmul.f32 %v73_v25, %v29_v10 }
 0x136   :  { %62 = vst.msk [vmem:[%s121_s3] sm:$0xff] %vm18_vm0, %v60_v26  ;;  %v53_v28 = vmul.f32 %v68_v21, %v45_v27 }
 0x138   :  { %v61_v29 = vadd.f32 %v69_v23, %v53_v28 }
 0x13a   :  { %63 = vst.msk [vmem:[%s121_s3 + $0x8] sm:$0xff] %vm18_vm0, %v61_v29 }

// kernel: prebert_forward.7
= control target key start
LH: loop header
LB: loop body
LE: loop exit
PB: predicated region body
PF: predicated region fallthrough
CT: control target
= control target key end

     0   :  { %vm56_vm0 = vcmask 261120   ;;  %v655_v6 = vmov 0.0   ;;  %vm656_vm1 = vmmov 0   ;;  %v657_v56 = vmov 1.0   ;;  %s870_s2 = inlined_call_operand.vmem [shape: f32[32,32], index: 2, kind: input, shape index: {}]   ;;  %s871_s0 = inlined_call_operand.vmem [shape: f32[16,32], index: 0, kind: input, shape index: {}]   ;;  %s872_s8 = inlined_call_operand.vmem [shape: f32[32,32], index: 8, kind: input, shape index: {}]   ;;  %s873_s1 = inlined_call_operand.vmem [shape: f32[2,32], index: 1, kind: input, shape index: {}]   ;;  %s874_s3 = inlined_call_operand.vmem [shape: f32[1,32], index: 3, kind: input, shape index: {}]   ;;  %s875_s6 = inlined_call_operand.vmem [shape: f32[64,32], index: 6, kind: input, shape index: {}]   ;;  %s876_s9 = inlined_call_operand.vmem [shape: f32[1,32], index: 9, kind: input, shape index: {}]   ;;  %s877_s10 = inlined_call_operand.vmem [shape: f32[32,2], index: 10, kind: input, shape index: {}]   ;;  %s878_s4 = inlined_call_operand.vmem [shape: f32[1,32], index: 4, kind: input, shape index: {}]   ;;  %s879_s5 = inlined_call_operand.vmem [shape: f32[1,32], index: 5, kind: input, shape index: {}]   ;;  %s880_s11 = inlined_call_operand.vmem [shape: f32[1,2], index: 11, kind: input, shape index: {}]   ;;  %s881_s13 = inlined_call_operand.vmem [shape: f32[2,2], index: 13, kind: output, shape index: {1}]   ;;  %s882_s7 = inlined_call_operand.vmem [shape: f32[1,64], index: 7, kind: input, shape index: {}]   ;;  %s883_s12 = inlined_call_operand.vmem [shape: f32[16,64], index: 12, kind: output, shape index: {0}]  }
   0x1   :  { %v48_v0 = vld [vmem:[%s870_s2 + $0x18] sm:$0xff]  ;;  %v47_v1 = vld [vmem:[%s870_s2 + $0x10] sm:$0xff]  ;;  %v43_v2 = vld [vmem:[%s871_s0] sm:$0xff]  ;;  %vm530_vm4 = vcmask 9216   ;;  %vm357_vm5 = vcmask 523264  }
   0x2   :  { %586 = vmatprep.subr.mxu0 %v48_v0  ;;  %v46_v3 = vld [vmem:[%s870_s2 + $0x8] sm:$0xff]  ;;  %594 = vmatprep.mubr.msk.f32.mxu0 %vm56_vm0, %v43_v2  ;;  %v45_v4 = vld [vmem:[%s870_s2] sm:$0xff]  ;;  %v364_v7 = vld [vmem:[%s872_s8 + $0x18] sm:$0xff] }
   0x3   :  { %587 = vmatpush3.msra.mxu0 %v48_v0  ;;  %v44_v5 = vld [vmem:[%s871_s0 + $0x8] sm:$0xff]  ;;  %v363_v8 = vld [vmem:[%s872_s8 + $0x10] sm:$0xff]  ;;  %v361_v10 = vld [vmem:[%s872_s8] sm:$0xff] }
   0x4   :  { %588 = vmatprep.subr.mxu0 %v47_v1  ;;  %v362_v9 = vld [vmem:[%s872_s8 + $0x8] sm:$0xff]  ;;  %v360_v11 = vld [vmem:[%s873_s1] sm:$0x3] }
   0x5   :  { %589 = vmatpush3.msra.mxu0 %v47_v1  ;;  %v540_v12 = vld [vmem:[%s874_s3] ss:$0 sm:$0xff] }
   0x6   :  { %590 = vmatprep.subr.mxu0 %v46_v3 }
   0x7   :  { %591 = vmatpush3.msra.mxu0 %v46_v3 }
   0x8   :  { %592 = vmatprep.subr.mxu0 %v45_v4 }
   0x9   :  { %593 = vmatpush3.msra.mxu0 %v45_v4 }
   0xa   :  { %595 = vmatmul.mubr.msk.f32.vlgmr.msra.gmra.mxu0 %vm56_vm0, %v44_v5  ;;  %616 = vmatprep.subr.mxu0 %v655_v6 }
   0xb   :  { %624 = vmatprep.mubr.msk.f32.mxu0 %vm656_vm1, %v655_v6  ;;  %617 = vmatpush3.msra.mxu0 %v364_v7  ;;  %v244_v7 = vld [vmem:[%s875_s6 + $0x38] sm:$0xff] }
   0xc   :  { %618 = vmatprep.subr.mxu0 %v655_v6  ;;  %597 = vmatprep.subr.msk.mxu1 %vm56_vm0, %v244_v7 }
   0xd   :  { %619 = vmatpush3.msra.mxu0 %v363_v8  ;;  %598 = vmatpush3.xpose.msk.msra.mxu1 %vm56_vm0, %v244_v7 }
   0xe   :  { %620 = vmatprep.subr.mxu0 %v655_v6 }
   0xf   :  { %621 = vmatpush3.msra.mxu0 %v362_v9 }
  0x10   :  { %622 = vmatprep.subr.mxu0 %v655_v6 }
  0x11   :  { %623 = vmatpush3.msra.mxu0 %v361_v10 }
  0x12   :  { %625 = vmatmul.mubr.msk.f32.vlgmr.msra.gmra.mxu0 %vm56_vm0, %v360_v11  ;;  %627 = vmatprep.subr.mxu0 %v655_v6 }
  0x13   :  { %635 = vmatprep.mubr.msk.f32.mxu0 %vm656_vm1, %v655_v6 }
  0xca   :  { %v596_v13 = vpop.f32.mrf.mxu0 }
  0xcb   :  { %v135_v14 = vadd.f32 %v596_v13, %v540_v12 }
  0xcc   :  { %v129_v15 = vpop.f32.mrf.mxu0 }
  0xcd   :  { %v141_v16 = vmul.f32 0.70710677, %v135_v14  ;;  %v130_v17 = vadd.f32 %v540_v12, %v129_v15  ;;  %v139_v1 = vmul.f32 0.5, %v135_v14 }
  0xcf   :  { %v147_v18 = vand.u32 2147483647, %v141_v16  ;;  %v140_v19 = vmul.f32 0.70710677, %v130_v17  ;;  %vm143_vm2 = vcmp.lt.f32.partialorder %v141_v16, 0.0  ;;  %v138_v62 = vmul.f32 0.5, %v130_v17 }
  0xd0   :  { %v145_v57 = vsel %vm143_vm2, -1.0, %v657_v56 }
  0xd1   :  { %v149_v20 = vmul.f32 0.3275911, %v147_v18  ;;  %v146_v21 = vand.u32 2147483647, %v140_v19  ;;  %v175_v25 = vsub.f32 0.0, %v147_v18  ;;  %vm142_vm3 = vcmp.lt.f32.partialorder %v140_v19, 0.0 }
  0xd2   :  { %v144_v60 = vsel %vm142_vm3, -1.0, %v657_v56  ;;  %v242_v19 = vld [vmem:[%s875_s6 + $0x28] sm:$0xff] }
  0xd3   :  { %v151_v22 = vadd.f32 1.0, %v149_v20  ;;  %v148_v23 = vmul.f32 0.3275911, %v146_v21  ;;  %v174_v26 = vsub.f32 0.0, %v146_v21  ;;  %v177_v27 = vmul.f32 %v175_v25, %v147_v18  ;;  %v243_v18 = vld [vmem:[%s875_s6 + $0x30] sm:$0xff]  ;;  %v241_v20 = vld [vmem:[%s875_s6 + $0x20] sm:$0xff] }
  0xd4   :  { %599 = vmatprep.subr.msk.mxu1 %vm56_vm0, %v243_v18  ;;  %v448_v25 = vld [vmem:[%s877_s10 + $0x10] sm:$0xff] }
  0xd5   :  { %641 = vrcp.f32 %v151_v22  ;;  %v150_v24 = vadd.f32 1.0, %v148_v23  ;;  %v176_v29 = vmul.f32 %v174_v26, %v146_v21  ;;  %v180_v30 = vmul.f32 1.442695, %v177_v27  ;;  %600 = vmatpush3.xpose.msk.msra.mxu1 %vm56_vm0, %v243_v18  ;;  %v441_v21 = vpop.f32.mrf.mxu0  ;;  %v240_v22 = vld [vmem:[%s875_s6 + $0x18] sm:$0xff]  ;;  %v556_v23 = vld [vmem:[%s876_s9] ss:$0 sm:$0xff] }
  0xd6   :  { %601 = vmatprep.subr.msk.mxu1 %vm56_vm0, %v242_v19  ;;  %v442_v26 = vadd.f32 %v556_v23, %v441_v21 }
  0xd7   :  { %643 = vrcp.f32 %v150_v24  ;;  %v178_v34 = vmul.f32 1.442695, %v176_v29  ;;  %v449_v24 = vld [vmem:[%s877_s10 + $0x18] sm:$0xff]  ;;  %v626_v27 = vpop.f32.mrf.mxu0  ;;  %v238_v29 = vld [vmem:[%s875_s6 + $0x8] sm:$0xff] }
  0xd8   :  { %645 = vpow2.f32 %v180_v30  ;;  %628 = vmatpush3.msra.mxu0 %v449_v24  ;;  %v237_v30 = vld [vmem:[%s875_s6] sm:$0xff] }
  0xd9   :  { %647 = vpow2.f32 %v178_v34  ;;  %602 = vmatpush3.xpose.msk.msra.mxu1 %vm56_vm0, %v242_v19  ;;  %629 = vmatprep.subr.mxu0 %v655_v6 }
  0xda   :  { %603 = vmatprep.subr.msk.mxu1 %vm56_vm0, %v241_v20  ;;  %649 = vtanh.f32 %v442_v26  ;;  %630 = vmatpush3.msra.mxu0 %v448_v25 }
  0xdb   :  { %631 = vmatprep.subr.mxu0 %v655_v6 }
  0xdd   :  { %604 = vmatpush3.xpose.msk.msra.mxu1 %vm56_vm0, %v241_v20 }
  0xde   :  { %605 = vmatprep.subr.msk.mxu1 %vm56_vm0, %v240_v22 }
  0xe1   :  { %606 = vmatpush3.xpose.msk.msra.mxu1 %vm56_vm0, %v240_v22 }
  0xe2   :  { %v642_v28 = vpop.eup %641 }
  0xe3   :  { %v157_v31 = vmul.f32 1.0614054, %v642_v28 }
  0xe4   :  { %v644_v32 = vpop.eup %643 }
  0xe5   :  { %v159_v33 = vadd.f32 -1.4531521, %v157_v31  ;;  %v156_v35 = vmul.f32 1.0614054, %v644_v32  ;;  %v646_v49 = vpop.eup %645  ;;  %v447_v31 = vld [vmem:[%s877_s10 + $0x8] sm:$0xff] }
  0xe6   :  { %v648_v53 = vpop.eup %647  ;;  %632 = vmatpush3.msra.mxu0 %v447_v31 }
  0xe7   :  { %v161_v36 = vmul.f32 %v642_v28, %v159_v33  ;;  %v158_v37 = vadd.f32 -1.4531521, %v156_v35  ;;  %633 = vmatprep.subr.mxu0 %v655_v6  ;;  %v446_v33 = vld [vmem:[%s877_s10] sm:$0xff] }
  0xe8   :  { %634 = vmatpush3.msra.mxu0 %v446_v33  ;;  %v543_v6 = vld [vmem:[%s878_s4] ss:$0 sm:$0xff] }
  0xe9   :  { %v163_v38 = vadd.f32 1.4214138, %v161_v36  ;;  %v160_v39 = vmul.f32 %v644_v32, %v158_v37 }
  0xeb   :  { %v165_v40 = vmul.f32 %v642_v28, %v163_v38  ;;  %v162_v41 = vadd.f32 1.4214138, %v160_v39 }
  0xed   :  { %v167_v42 = vadd.f32 -0.28449672, %v165_v40  ;;  %v164_v43 = vmul.f32 %v644_v32, %v162_v41 }
  0xef   :  { %v169_v44 = vmul.f32 %v642_v28, %v167_v42  ;;  %v166_v45 = vadd.f32 -0.28449672, %v164_v43  ;;  %v544_v42 = vld [vmem:[%s879_s5] ss:$0 sm:$0xff] }
  0xf1   :  { %v171_v46 = vadd.f32 0.2548296, %v169_v44  ;;  %v168_v47 = vmul.f32 %v644_v32, %v166_v45 }
  0xf3   :  { %v173_v48 = vmul.f32 %v642_v28, %v171_v46  ;;  %v170_v50 = vadd.f32 0.2548296, %v168_v47  ;;  %v239_v28 = vld [vmem:[%s875_s6 + $0x10] sm:$0xff] }
  0xf4   :  { %607 = vmatprep.subr.msk.mxu1 %vm56_vm0, %v239_v28 }
  0xf5   :  { %v183_v51 = vmul.f32 %v646_v49, %v173_v48  ;;  %v172_v52 = vmul.f32 %v644_v32, %v170_v50  ;;  %608 = vmatpush3.xpose.msk.msra.mxu1 %vm56_vm0, %v239_v28  ;;  %v650_v32 = vpop.eup %649  ;;  %v558_v50 = vld [vmem:[%s880_s11] ss:$0 sm:$0xff] }
  0xf6   :  { %609 = vmatprep.subr.msk.mxu1 %vm56_vm0, %v238_v29  ;;  %636 = vmatmul.mubr.msk.f32.vlgmr.msra.gmra.mxu0 %vm56_vm0, %v650_v32 }
  0xf7   :  { %v185_v54 = vsub.f32 1.0, %v183_v51  ;;  %v182_v55 = vmul.f32 %v648_v53, %v172_v52  ;;  %v545_v53 = vld [vmem:[%s882_s7] ss:$0 sm:$0xff] }
  0xf9   :  { %v184_v58 = vsub.f32 1.0, %v182_v55  ;;  %v187_v59 = vmul.f32 %v185_v54, %v145_v57  ;;  %610 = vmatpush3.xpose.msk.msra.mxu1 %vm56_vm0, %v238_v29 }
  0xfa   :  { %611 = vmatprep.subr.msk.mxu1 %vm56_vm0, %v237_v30 }
  0xfb   :  { %v186_v61 = vmul.f32 %v184_v58, %v144_v60  ;;  %v189_v0 = vadd.f32 1.0, %v187_v59 }
  0xfd   :  { %v188_v63 = vadd.f32 1.0, %v186_v61  ;;  %v191_v4 = vmul.f32 %v189_v0, %v139_v1  ;;  %612 = vmatpush3.xpose.msk.msra.mxu1 %vm56_vm0, %v237_v30 }
  0xff   :  { %v190_v2 = vmul.f32 %v188_v63, %v138_v62  ;;  %v197_v5 = vsel %vm56_vm0, %v191_v4, 0.0 }
 0x101   :  { %v194_v3 = vsel %vm56_vm0, %v190_v2, 0.0 }
 0x102   :  { %195 = vadd.xlane.f32.xlu0 %v194_v3 }
 0x106   :  { %198 = vadd.xlane.f32.xlu0 %v197_v5 }
 0x18b   :  { %v196_v8 = vpop.xlane.xlu0 %195 }
 0x18c   :  { %v201_v9 = vmul.f32 0.03125, %v196_v8 }
 0x18e   :  { %v781_v10 = vsub.f32 %v190_v2, %v201_v9 }
 0x18f   :  { %v199_v11 = vpop.xlane.xlu0 %198 }
 0x190   :  { %v202_v12 = vmul.f32 0.03125, %v199_v11  ;;  %v205_v13 = vmul.f32 %v781_v10, %v781_v10 }
 0x192   :  { %v785_v14 = vsub.f32 %v191_v4, %v202_v12  ;;  %v207_v15 = vsel %vm56_vm0, %v205_v13, 0.0 }
 0x193   :  { %208 = vadd.xlane.f32.xlu1 %v207_v15 }
 0x194   :  { %v206_v16 = vmul.f32 %v785_v14, %v785_v14 }
 0x196   :  { %v210_v17 = vsel %vm56_vm0, %v206_v16, 0.0 }
 0x197   :  { %211 = vadd.xlane.f32.xlu1 %v210_v17 }
 0x1b6   :  { %v526_v49 = vpop.f32.mrf.mxu0 }
 0x1b7   :  { %v527_v52 = vadd.f32 %v558_v50, %v526_v49 }
 0x1b8   :  { %v637_v51 = vpop.f32.mrf.mxu0 }
 0x1b9   :  { %531 = vst.msk [vmem:[%s881_s13] sm:$0x3] %vm530_vm4, %v527_v52 }
 0x21c   :  { %v209_v34 = vpop.xlane.xlu1 %208 }
 0x21d   :  { %v213_v35 = vmul.f32 0.03125, %v209_v34 }
 0x21f   :  { %v215_v36 = vadd.f32 1e-12, %v213_v35 }
 0x220   :  { %v212_v37 = vpop.xlane.xlu1 %211 }
 0x221   :  { %651 = vrsqrt.f32 %v215_v36  ;;  %v214_v38 = vmul.f32 0.03125, %v212_v37 }
 0x223   :  { %v216_v39 = vadd.f32 1e-12, %v214_v38 }
 0x225   :  { %653 = vrsqrt.f32 %v216_v39 }
 0x22e   :  { %v652_v40 = vpop.eup %651 }
 0x22f   :  { %v219_v41 = vmul.f32 %v652_v40, %v781_v10 }
 0x231   :  { %v227_v43 = vmul.f32 %v543_v6, %v219_v41 }
 0x232   :  { %v654_v44 = vpop.eup %653 }
 0x233   :  { %v220_v45 = vmul.f32 %v654_v44, %v785_v14  ;;  %v235_v46 = vadd.f32 %v544_v42, %v227_v43 }
 0x235   :  { %v228_v47 = vmul.f32 %v543_v6, %v220_v45  ;;  %613 = vmatprep.mubr.msk.f32.mxu1 %vm56_vm0, %v235_v46 }
 0x237   :  { %v236_v48 = vadd.f32 %v544_v42, %v228_v47 }
 0x239   :  { %614 = vmatmul.mubr.msk.f32.vlgmr.msra.gmra.mxu1 %vm56_vm0, %v236_v48 }
 0x2f9   :  { %v615_v54 = vpop.f32.mrf.mxu1 }
 0x2fa   :  { %v354_v55 = vadd.f32 %v615_v54, %v545_v53 }
 0x2fb   :  { %v348_v56 = vpop.f32.mrf.mxu1 }
 0x2fc   :  { %359 = vst.msk [vmem:[%s883_s12 + $0x8] sm:$0xff] %vm357_vm5, %v354_v55  ;;  %v349_v57 = vadd.f32 %v545_v53, %v348_v56 }
 0x2fe   :  { %358 = vst.msk [vmem:[%s883_s12] sm:$0xff] %vm357_vm5, %v349_v57 }

// kernel: prebert_forward.5
= control target key start
LH: loop header
LB: loop body
LE: loop exit
PB: predicated region body
PF: predicated region fallthrough
CT: control target
= control target key end

     0   :  { %s1978_s29 = smov 0   ;;  %s2193_s0 = inlined_call_operand.vmem [shape: f32[2,8,32], index: 0, kind: input, shape index: {}]   ;;  %s2194_s1 = inlined_call_operand.vmem [shape: f32[2,1,8], index: 1, kind: input, shape index: {}]   ;;  %s2195_s2 = inlined_call_operand.vmem [shape: f32[32,96], index: 2, kind: input, shape index: {}]   ;;  %s2196_s3 = inlined_call_operand.vmem [shape: f32[1,96], index: 3, kind: input, shape index: {}]   ;;  %s2197_s4 = inlined_call_operand.vmem [shape: f32[32,32], index: 4, kind: input, shape index: {}]   ;;  %s2198_s5 = inlined_call_operand.vmem [shape: f32[1,32], index: 5, kind: input, shape index: {}]   ;;  %s2199_s6 = inlined_call_operand.vmem [shape: f32[1,32], index: 6, kind: input, shape index: {}]   ;;  %s2200_s7 = inlined_call_operand.vmem [shape: f32[1,32], index: 7, kind: input, shape index: {}]   ;;  %s2201_s8 = inlined_call_operand.vmem [shape: f32[32,64], index: 8, kind: input, shape index: {}]   ;;  %s2202_s9 = inlined_call_operand.vmem [shape: f32[1,64], index: 9, kind: input, shape index: {}]   ;;  %s2203_s10 = inlined_call_operand.vmem [shape: f32[64,32], index: 10, kind: input, shape index: {}]   ;;  %s2204_s11 = inlined_call_operand.vmem [shape: f32[1,32], index: 11, kind: input, shape index: {}]   ;;  %s2205_s12 = inlined_call_operand.vmem [shape: f32[1,32], index: 12, kind: input, shape index: {}]   ;;  %s2206_s13 = inlined_call_operand.vmem [shape: f32[1,32], index: 13, kind: input, shape index: {}]   ;;  %s2207_s14 = inlined_call_operand.vmem [shape: f32[2,8,32], index: 14, kind: output, shape index: {}]  }
   0x1 LB: > { %s1663_s30 = sadd.s32 4294967295, %s1884_s29   ;;  %p1667_p0 = scmp.ge.s32.totalorder %s1884_s29, 1  ;;  %s1884_s29 = sphi %s1978_s29, %s24_s29  }
   0x2   : > { %p419_p1 = scmp.lt.s32.totalorder %s1884_s29, 3 }
   0x4   : > { %p420_p2 = pnand %p1667_p0, %p419_p1 }
   0x5   : > { %p466_p3 = scmp.lt.s32.totalorder (!%p420_p2), %s1663_s30, 1  ;;  %s1888_s15 = smov (!%p420_p2), 120  }
   0x6   : > { %423 = sbr.rel (%p420_p2) target bundleno = 2464 (0x9a0), region = 76  ;;  %s1889_s16 = smov (!%p420_p2), 96  }
   0x7   : > { %s1890_s17 = smov (!%p420_p2), 80   ;;  %s1891_s18 = smov (!%p420_p2), 88  }
   0x8   : > { %s1892_s19 = smov (!%p420_p2), 72   ;;  %s1893_s20 = smov (!%p420_p2), 112  }
   0x9   : > { %s1894_s22 = smov (!%p420_p2), 104   ;;  %s1896_s27 = smov (!%p420_p2), 64  }
   0xa   : > { %s1897_s28 = smov (!%p420_p2), 48  }
   0xb   : > { %v482_v0 = vld [vmem:[%s2195_s2 + $0x18] sm:$0xff]  ;;  %v1886_v1 = vmov 0.0   ;;  %v481_v2 = vld [vmem:[%s2195_s2 + $0x10] sm:$0xff]  ;;  %vm1887_vm0 = vmmov 0   ;;  %s2209_s30 = smov (!%p466_p3, %s1663_s30), 1  ;;  %v480_v3 = vld [vmem:[%s2195_s2 + $0x8] sm:$0xff] }
   0xc   : > { %1737 = vmatprep.subr.mxu1 %v1886_v1  ;;  %1745 = vmatprep.mubr.msk.f32.mxu1 %vm1887_vm0, %v1886_v1  ;;  %s1668_s21 = sshll.u32 %s2209_s30, 3  ;;  %v479_v4 = vld [vmem:[%s2195_s2] sm:$0xff]  ;;  %vm490_vm1 = vcmask 261120   ;;  %vm567_vm2 = vcmask 64512   ;;  %s472_s25 = scalar_lea.vmem %s2194_s1, %s2209_s30  ;;  %vm1251_vm3 = vcmask 130048   ;;  %vm1253_vm4 = vcmask 195584  }
   0xd   : > { %1738 = vmatpush3.msra.mxu1 %v482_v0  ;;  %1758 = vmatprep.subr.mxu0 %v1886_v1  ;;  %s469_s26 = scalar_lea.vmem %s2193_s0, %s1668_s21  ;;  %v1670_v6 = vld [vmem:[%s2196_s3] ss:$0 sm:$0xff]  ;;  %vm1496_vm6 = vcmask 523264  }
   0xe   : > { %1739 = vmatprep.subr.mxu1 %v1886_v1  ;;  %1760 = vmatprep.mubr.msk.f32.mxu0 %vm1887_vm0, %v1886_v1  ;;  %v2014_v5 = vld [vmem:[%s469_s26] sm:$0xff]  ;;  %s1895_s26 = smov 56  }
   0xf   : > { %1740 = vmatpush3.msra.mxu1 %v481_v2  ;;  %v1674_v18 = vld [vmem:[%s472_s25] ss:$0 sm:$0xff] }
  0x10   : > { %1741 = vmatprep.subr.mxu1 %v1886_v1 }
  0x11   : > { %1742 = vmatpush3.msra.mxu1 %v480_v3 }
  0x12   : > { %1743 = vmatprep.subr.mxu1 %v1886_v1 }
  0x13   : > { %1744 = vmatpush3.msra.mxu1 %v479_v4 }
  0x14   : > { %1746 = vmatmul.mubr.msk.f32.vlgmr.msra.gmra.mxu1 %vm490_vm1, %v2014_v5  ;;  %1748 = vmatprep.subr.mxu1 %v1886_v1 }
  0x15   : > { %1750 = vmatprep.mubr.msk.f32.mxu1 %vm1887_vm0, %v1886_v1 }
  0xd4   : > { %v560_v7 = vpop.f32.mrf.mxu1 }
  0xd5   : > { %v2025_v8 = vadd.f32 %v1670_v6, %v560_v7 }
  0xd6   : > { %v1747_v9 = vpop.f32.mrf.mxu1 }
  0xd7   : > { %737 = vrot.lane.b32.xlu1 %v2025_v8, %s1888_s15  ;;  %565 = vrot.lane.b32.xlu0 %v2025_v8, %s1889_s16  ;;  %s1898_s15 = smov 40  }
  0xdb   : > { %906 = vrot.lane.b32.xlu1 %v2025_v8, %s1890_s17  ;;  %739 = vrot.lane.b32.xlu0 %v2025_v8, %s1891_s18  ;;  %s1899_s18 = smov 8  }
  0xdf   : > { %1073 = vrot.lane.b32.xlu1 %v2025_v8, %s1892_s19  ;;  %904 = vrot.lane.b32.xlu0 %v2025_v8, %s1893_s20 }
  0xe3   : > { %1071 = vrot.lane.b32.xlu0 %v2025_v8, %s1894_s22 }
 0x149   : > { %v738_v10 = vpop.permute.xlu1 %737  ;;  %v566_v11 = vpop.permute.xlu0 %565 }
 0x14a   : > { %1749 = vmatpush3.xpose.msk.msra.mxu1 %vm567_vm2, %v566_v11 }
 0x14b   : > { %1753 = vmatprep.subr.mxu1 %v1886_v1 }
 0x14d   : > { %1751 = vmatmul.mubr.msk.f32.vlgmr.msra.gmra.mxu1 %vm567_vm2, %v2025_v8  ;;  %v740_v12 = vpop.permute.xlu0 %739  ;;  %v907_v13 = vpop.permute.xlu1 %906 }
 0x14e   : > { %1759 = vmatpush3.xpose.msk.msra.mxu0 %vm567_vm2, %v740_v12  ;;  %1755 = vmatprep.mubr.msk.f32.mxu1 %vm1887_vm0, %v1886_v1  ;;  %v1258_v12 = vld [vmem:[%s2197_s4 + $0x18] sm:$0xff] }
 0x14f   : > { %1768 = vmatprep.subr.mxu0 %v1886_v1 }
 0x151   : > { %1761 = vmatmul.mubr.msk.f32.vlgmr.msra.gmra.mxu0 %vm567_vm2, %v738_v10  ;;  %v905_v14 = vpop.permute.xlu0 %904  ;;  %v1074_v15 = vpop.permute.xlu1 %1073 }
 0x152   : > { %1769 = vmatpush3.xpose.msk.msra.mxu0 %vm567_vm2, %v907_v13  ;;  %1770 = vmatprep.mubr.msk.f32.mxu0 %vm1887_vm0, %v1886_v1 }
 0x153   : > { %1778 = vmatprep.subr.mxu0 %v1886_v1 }
 0x155   : > { %1771 = vmatmul.mubr.msk.f32.vlgmr.msra.gmra.mxu0 %vm567_vm2, %v905_v14  ;;  %v1072_v16 = vpop.permute.xlu0 %1071 }
 0x156   : > { %1779 = vmatpush3.xpose.msk.msra.mxu0 %vm567_vm2, %v1074_v15  ;;  %1780 = vmatprep.mubr.msk.f32.mxu0 %vm1887_vm0, %v1886_v1 }
 0x157   : > { %1788 = vmatprep.subr.mxu0 %v1886_v1 }
 0x159   : > { %1781 = vmatmul.mubr.msk.f32.vlgmr.msra.gmra.mxu0 %vm567_vm2, %v1072_v16 }
 0x15a   : > { %1796 = vmatprep.mubr.msk.f32.mxu0 %vm1887_vm0, %v1886_v1  ;;  %1789 = vmatpush3.msra.mxu0 %v1258_v12 }
 0x15b   : > { %1790 = vmatprep.subr.mxu0 %v1886_v1 }
 0x20d   : > { %v638_v17 = vpop.f32.mrf.mxu1 }
 0x20e   : > { %v642_v19 = vmul.f32 0.35355338, %v638_v17  ;;  %v1257_v17 = vld [vmem:[%s2197_s4 + $0x10] sm:$0xff] }
 0x20f   : > { %v1752_v20 = vpop.f32.mrf.mxu1  ;;  %1791 = vmatpush3.msra.mxu0 %v1257_v17 }
 0x210   : > { %v649_v21 = vadd.f32 %v1674_v18, %v642_v19  ;;  %1792 = vmatprep.subr.mxu0 %v1886_v1  ;;  %v1255_v19 = vld [vmem:[%s2197_s4] sm:$0xff] }
 0x211   : > { %v811_v22 = vpop.f32.mrf.mxu0 }
 0x212   : > { %v815_v23 = vmul.f32 0.35355338, %v811_v22  ;;  %v650_v24 = vsel %vm567_vm2, %v649_v21, -inf }
 0x213   : > { %v1762_v25 = vpop.f32.mrf.mxu0  ;;  %651 = vmax.xlane.f32.xlu1 %v650_v24 }
 0x214   : > { %v816_v26 = vadd.f32 %v1674_v18, %v815_v23 }
 0x215   : > { %v978_v27 = vpop.f32.mrf.mxu0 }
 0x216   : > { %v982_v28 = vmul.f32 0.35355338, %v978_v27  ;;  %v817_v29 = vsel %vm567_vm2, %v816_v26, -inf }
 0x217   : > { %818 = vmax.xlane.f32.xlu0 %v817_v29  ;;  %v1772_v30 = vpop.f32.mrf.mxu0 }
 0x218   : > { %v983_v31 = vadd.f32 %v1674_v18, %v982_v28  ;;  %v1685_v30 = vld [vmem:[%s2198_s5] ss:$0 sm:$0xff] }
 0x219   : > { %v1145_v32 = vpop.f32.mrf.mxu0 }
 0x21a   : > { %v1149_v33 = vmul.f32 0.35355338, %v1145_v32  ;;  %v984_v34 = vsel %vm567_vm2, %v983_v31, -inf }
 0x21b   : > { %985 = vmax.xlane.f32.xlu0 %v984_v34  ;;  %v1782_v35 = vpop.f32.mrf.mxu0 }
 0x21c   : > { %v1150_v36 = vadd.f32 %v1674_v18, %v1149_v33  ;;  %v1256_v18 = vld [vmem:[%s2197_s4 + $0x8] sm:$0xff] }
 0x21d   : > { %1793 = vmatpush3.msra.mxu0 %v1256_v18 }
 0x21e   : > { %v1151_v37 = vsel %vm567_vm2, %v1150_v36, -inf  ;;  %1794 = vmatprep.subr.mxu0 %v1886_v1 }
 0x21f   : > { %1152 = vmax.xlane.f32.xlu1 %v1151_v37  ;;  %1795 = vmatpush3.msra.mxu0 %v1255_v19 }
 0x220   : > { %1810 = vmatprep.subr.mxu0 %v1886_v1 }
 0x230   : > { %828 = vrot.lane.b32.xlu1 %v2025_v8, %s1895_s26  ;;  %s1900_s26 = smov 16  }
 0x29c   : > { %v652_v38 = vpop.xlane.xlu1 %651 }
 0x29d   : > { %v653_v39 = vsub.f32 %v649_v21, %v652_v38 }
 0x29f   : > { %v654_v40 = vmul.f32 1.442695, %v653_v39 }
 0x2a0   : > { %v819_v41 = vpop.xlane.xlu0 %818 }
 0x2a1   : > { %1854 = vpow2.f32 %v654_v40  ;;  %v820_v42 = vsub.f32 %v816_v26, %v819_v41  ;;  %v1373_v41 = vld [vmem:[%s2201_s8 + $0x18] sm:$0xff] }
 0x2a3   : > { %v821_v43 = vmul.f32 1.442695, %v820_v42  ;;  %v1372_v42 = vld [vmem:[%s2201_s8 + $0x10] sm:$0xff] }
 0x2a4   : > { %v986_v53 = vpop.xlane.xlu0 %985 }
 0x2a5   : > { %1856 = vpow2.f32 %v821_v43  ;;  %v987_v54 = vsub.f32 %v983_v31, %v986_v53  ;;  %v1370_v43 = vld [vmem:[%s2201_s8] sm:$0xff]  ;;  %v1488_v53 = vld [vmem:[%s2203_s10 + $0x38] sm:$0xff] }
 0x2a7   : > { %v988_v55 = vmul.f32 1.442695, %v987_v54  ;;  %v1487_v54 = vld [vmem:[%s2203_s10 + $0x30] sm:$0xff] }
 0x2a8   : > { %v1153_v44 = vpop.xlane.xlu1 %1152 }
 0x2a9   : > { %v1154_v45 = vsub.f32 %v1150_v36, %v1153_v44 }
 0x2ab   : > { %v1155_v46 = vmul.f32 1.442695, %v1154_v45 }
 0x2ac   : > { %v829_v58 = vpop.permute.xlu1 %828 }
 0x2ad   : > { %1858 = vpow2.f32 %v1155_v46 }
 0x2ae   : > { %v1855_v47 = vpop.eup %1854  ;;  %1860 = vpow2.f32 %v988_v55  ;;  %v1486_v55 = vld [vmem:[%s2203_s10 + $0x28] sm:$0xff] }
 0x2af   : > { %v656_v48 = vsel %vm567_vm2, %v1855_v47, 0.0 }
 0x2b0   : > { %657 = vadd.xlane.f32.xlu0 %v656_v48  ;;  %v1687_v48 = vld [vmem:[%s2199_s6] ss:$0 sm:$0xff] }
 0x2b2   : > { %v1857_v49 = vpop.eup %1856 }
 0x2b3   : > { %v823_v50 = vsel %vm567_vm2, %v1857_v49, 0.0 }
 0x2b4   : > { %824 = vadd.xlane.f32.xlu1 %v823_v50  ;;  %v1688_v50 = vld [vmem:[%s2200_s7] ss:$0 sm:$0xff] }
 0x2ba   : > { %v1859_v51 = vpop.eup %1858 }
 0x2bb   : > { %v1157_v52 = vsel %vm567_vm2, %v1859_v51, 0.0  ;;  %v1861_v56 = vpop.eup %1860 }
 0x2bc   : > { %1158 = vadd.xlane.f32.xlu1 %v1157_v52  ;;  %v990_v57 = vsel %vm567_vm2, %v1861_v56, 0.0 }
 0x2c6   : > { %661 = vrot.lane.b32.xlu0 %v2025_v8, %s1896_s27  ;;  %s1901_s27 = smov 24  }
 0x2cd   : > { %995 = vrot.lane.b32.xlu1 %v2025_v8, %s1897_s28 }
 0x2e5   : > { %991 = vadd.xlane.f32.xlu0 %v990_v57  ;;  %v1484_v57 = vld [vmem:[%s2203_s10 + $0x18] sm:$0xff] }
 0x2fb   : > { %1162 = vrot.lane.b32.xlu0 %v2025_v8, %s1898_s15  ;;  %s476_s15 = scalar_lea.vmem %s2207_s14, %s1668_s21 }
 0x339   : > { %v658_v59 = vpop.xlane.xlu0 %657 }
 0x33a   : > { %1862 = vrcp.f32 %v658_v59  ;;  %v1482_v59 = vld [vmem:[%s2203_s10 + $0x8] sm:$0xff] }
 0x33d   : > { %v662_v60 = vpop.permute.xlu0 %661  ;;  %v825_v61 = vpop.xlane.xlu1 %824 }
 0x33e   : > { %1864 = vrcp.f32 %v825_v61  ;;  %1754 = vmatpush3.msra.mxu1 %v662_v60  ;;  %v1481_v60 = vld [vmem:[%s2203_s10] sm:$0xff] }
 0x33f   : > { %1763 = vmatprep.subr.mxu1 %v1886_v1  ;;  %v1689_v61 = vld [vmem:[%s2202_s9] ss:$0 sm:$0xff] }
 0x345   : > { %v1159_v63 = vpop.xlane.xlu1 %1158 }
 0x347   : > { %v1863_v62 = vpop.eup %1862 }
 0x348   : > { %v660_v0 = vmul.f32 %v1863_v62, %v1855_v47 }
 0x349   : > { %v996_v4 = vpop.permute.xlu1 %995 }
 0x34a   : > { %1756 = vmatmul.mubr.msk.f32.vlgmr.msra.gmra.mxu1 %vm567_vm2, %v660_v0 }
 0x34b   : > { %v1865_v2 = vpop.eup %1864  ;;  %1764 = vmatpush3.msra.mxu1 %v829_v58  ;;  %1765 = vmatprep.mubr.msk.f32.mxu1 %vm1887_vm0, %v1886_v1  ;;  %v1483_v58 = vld [vmem:[%s2203_s10 + $0x10] sm:$0xff] }
 0x34c   : > { %1773 = vmatprep.subr.mxu1 %v1886_v1  ;;  %v827_v3 = vmul.f32 %v1865_v2, %v1857_v49 }
 0x34e   : > { %1766 = vmatmul.mubr.msk.f32.vlgmr.msra.gmra.mxu1 %vm567_vm2, %v827_v3 }
 0x34f   : > { %1774 = vmatpush3.msra.mxu1 %v996_v4  ;;  %1775 = vmatprep.mubr.msk.f32.mxu1 %vm1887_vm0, %v1886_v1 }
 0x350   : > { %1783 = vmatprep.subr.mxu1 %v1886_v1 }
 0x36e   : > { %v992_v6 = vpop.xlane.xlu0 %991 }
 0x36f   : > { %1866 = vrcp.f32 %v992_v6 }
 0x370   : > { %1868 = vrcp.f32 %v1159_v63 }
 0x372   : > { %v1163_v10 = vpop.permute.xlu0 %1162 }
 0x37c   : > { %v1867_v7 = vpop.eup %1866 }
 0x37d   : > { %v994_v8 = vmul.f32 %v1867_v7, %v1861_v56  ;;  %v1869_v9 = vpop.eup %1868  ;;  %v1485_v56 = vld [vmem:[%s2203_s10 + $0x20] sm:$0xff] }
 0x37e   : > { %v1161_v11 = vmul.f32 %v1869_v9, %v1859_v51 }
 0x37f   : > { %1776 = vmatmul.mubr.msk.f32.vlgmr.msra.gmra.mxu1 %vm567_vm2, %v994_v8 }
 0x380   : > { %1784 = vmatpush3.msra.mxu1 %v1163_v10  ;;  %1785 = vmatprep.mubr.msk.f32.mxu1 %vm1887_vm0, %v1886_v1 }
 0x381   : > { %1799 = vmatprep.subr.mxu1 %v1886_v1 }
 0x383   : > { %1786 = vmatmul.mubr.msk.f32.vlgmr.msra.gmra.mxu1 %vm567_vm2, %v1161_v11 }
 0x384   : > { %1807 = vmatprep.mubr.msk.f32.mxu1 %vm1887_vm0, %v1886_v1  ;;  %1800 = vmatpush3.msra.mxu1 %v1373_v41 }
 0x385   : > { %1801 = vmatprep.subr.mxu1 %v1886_v1 }
 0x386   : > { %1802 = vmatpush3.msra.mxu1 %v1372_v42 }
 0x387   : > { %1803 = vmatprep.subr.mxu1 %v1886_v1 }
 0x40a   : > { %v733_v13 = vpop.f32.mrf.mxu1 }
 0x40c   : > { %v1757_v14 = vpop.f32.mrf.mxu1 }
 0x40e   : > { %v900_v15 = vpop.f32.mrf.mxu1 }
 0x40f   : > { %1239 = vrot.lane.b32.xlu1 %v900_v15, %s1899_s18 }
 0x410   : > { %v1767_v16 = vpop.f32.mrf.mxu1 }
 0x43f   : > { %v1067_v20 = vpop.f32.mrf.mxu1 }
 0x440   : > { %1243 = vrot.lane.b32.xlu0 %v1067_v20, %s1900_s26 }
 0x441   : > { %v1777_v21 = vpop.f32.mrf.mxu1 }
 0x443   : > { %v1234_v22 = vpop.f32.mrf.mxu1 }
 0x444   : > { %1247 = vrot.lane.b32.xlu1 %v1234_v22, %s1901_s27  ;;  %v1902_v22 = vmov 1.0  }
 0x445   : > { %v1787_v23 = vpop.f32.mrf.mxu1 }
 0x481   : > { %v1240_v24 = vpop.permute.xlu1 %1239 }
 0x482   : > { %v1250_v26 = vsel %vm567_vm2, %v733_v13, %v1240_v24 }
 0x4b2   : > { %v1244_v25 = vpop.permute.xlu0 %1243 }
 0x4b3   : > { %v1252_v27 = vsel %vm1251_vm3, %v1250_v26, %v1244_v25 }
 0x4b6   : > { %v1248_v28 = vpop.permute.xlu1 %1247 }
 0x4b7   : > { %v1254_v29 = vsel %vm1253_vm4, %v1252_v27, %v1248_v28  ;;  %v1691_v28 = vld [vmem:[%s2204_s11] ss:$0 sm:$0xff] }
 0x4b8   : > { %1797 = vmatmul.mubr.msk.f32.vlgmr.msra.gmra.mxu0 %vm490_vm1, %v1254_v29 }
 0x4b9   : > { %1826 = vmatprep.mubr.msk.f32.mxu0 %vm1887_vm0, %v1886_v1  ;;  %1811 = vmatpush3.msra.mxu0 %v1488_v53 }
 0x4ba   : > { %1812 = vmatprep.subr.mxu0 %v1886_v1 }
 0x4bb   : > { %1813 = vmatpush3.msra.mxu0 %v1487_v54 }
 0x4bc   : > { %1814 = vmatprep.subr.mxu0 %v1886_v1 }
 0x4bd   : > { %1815 = vmatpush3.msra.mxu0 %v1486_v55 }
 0x4be   : > { %1816 = vmatprep.subr.mxu0 %v1886_v1 }
 0x4bf   : > { %1817 = vmatpush3.msra.mxu0 %v1485_v56 }
 0x4c0   : > { %1818 = vmatprep.subr.mxu0 %v1886_v1 }
 0x4c1   : > { %1819 = vmatpush3.msra.mxu0 %v1484_v57 }
 0x4c2   : > { %1820 = vmatprep.subr.mxu0 %v1886_v1 }
 0x4c3   : > { %1821 = vmatpush3.msra.mxu0 %v1483_v58 }
 0x4c4   : > { %1822 = vmatprep.subr.mxu0 %v1886_v1 }
 0x4c5   : > { %1823 = vmatpush3.msra.mxu0 %v1482_v59 }
 0x4c6   : > { %1824 = vmatprep.subr.mxu0 %v1886_v1 }
 0x4c7   : > { %1825 = vmatpush3.msra.mxu0 %v1481_v60 }
 0x578   : > { %v1335_v31 = vpop.f32.mrf.mxu0 }
 0x579   : > { %v1336_v32 = vadd.f32 %v1685_v30, %v1335_v31 }
 0x57a   : > { %v1798_v33 = vpop.f32.mrf.mxu0 }
 0x57b   : > { %v1339_v34 = vadd.f32 %v1336_v32, %v2014_v5  ;;  %v1371_v5 = vld [vmem:[%s2201_s8 + $0x8] sm:$0xff] }
 0x57c   : > { %1804 = vmatpush3.msra.mxu1 %v1371_v5  ;;  %v1693_v5 = vld [vmem:[%s2205_s12] ss:$0 sm:$0xff] }
 0x57d   : > { %v1342_v35 = vsel %vm490_vm1, %v1339_v34, 0.0  ;;  %1805 = vmatprep.subr.mxu1 %v1886_v1 }
 0x57e   : > { %1343 = vadd.xlane.f32.xlu0 %v1342_v35  ;;  %1806 = vmatpush3.msra.mxu1 %v1370_v43 }
 0x607   : > { %v1344_v36 = vpop.xlane.xlu0 %1343 }
 0x608   : > { %v1346_v37 = vmul.f32 0.03125, %v1344_v36 }
 0x60a   : > { %v1347_v38 = vsub.f32 %v1339_v34, %v1346_v37 }
 0x60c   : > { %v1348_v39 = vmul.f32 %v1347_v38, %v1347_v38 }
 0x60e   : > { %v1349_v40 = vsel %vm490_vm1, %v1348_v39, 0.0 }
 0x60f   : > { %1350 = vadd.xlane.f32.xlu1 %v1349_v40 }
 0x698   : > { %v1351_v44 = vpop.xlane.xlu1 %1350 }
 0x699   : > { %v1352_v45 = vmul.f32 0.03125, %v1351_v44  ;;  %v1694_v44 = vld [vmem:[%s2206_s13] ss:$0 sm:$0xff] }
 0x69b   : > { %v1353_v46 = vadd.f32 1e-12, %v1352_v45 }
 0x69d   : > { %1870 = vrsqrt.f32 %v1353_v46 }
 0x6aa   : > { %v1871_v47 = vpop.eup %1870 }
 0x6ab   : > { %v1355_v49 = vmul.f32 %v1871_v47, %v1347_v38 }
 0x6ad   : > { %v1362_v51 = vmul.f32 %v1687_v48, %v1355_v49 }
 0x6af   : > { %v2134_v52 = vadd.f32 %v1688_v50, %v1362_v51 }
 0x6b1   : > { %1808 = vmatmul.mubr.msk.f32.vlgmr.msra.gmra.mxu1 %vm490_vm1, %v2134_v52 }
 0x771   : > { %v1450_v62 = vpop.f32.mrf.mxu1 }
 0x772   : > { %v1451_v63 = vadd.f32 %v1689_v61, %v1450_v62 }
 0x773   : > { %v1809_v0 = vpop.f32.mrf.mxu1 }
 0x774   : > { %v1455_v2 = vmul.f32 0.70710677, %v1451_v63  ;;  %v1454_v25 = vmul.f32 0.5, %v1451_v63 }
 0x776   : > { %v1458_v3 = vand.u32 2147483647, %v1455_v2  ;;  %vm1456_vm5 = vcmp.lt.f32.partialorder %v1455_v2, 0.0 }
 0x777   : > { %v1457_v23 = vsel %vm1456_vm5, -1.0, %v1902_v22 }
 0x778   : > { %v1459_v4 = vmul.f32 0.3275911, %v1458_v3  ;;  %v1472_v7 = vsub.f32 0.0, %v1458_v3 }
 0x77a   : > { %v1460_v6 = vadd.f32 1.0, %v1459_v4  ;;  %v1473_v8 = vmul.f32 %v1472_v7, %v1458_v3 }
 0x77c   : > { %1872 = vrcp.f32 %v1460_v6  ;;  %v1474_v11 = vmul.f32 1.442695, %v1473_v8 }
 0x77e   : > { %1874 = vpow2.f32 %v1474_v11 }
 0x789   : > { %v1873_v9 = vpop.eup %1872 }
 0x78a   : > { %v1463_v10 = vmul.f32 1.0614054, %v1873_v9 }
 0x78b   : > { %v1875_v19 = vpop.eup %1874 }
 0x78c   : > { %v1464_v12 = vadd.f32 -1.4531521, %v1463_v10 }
 0x78e   : > { %v1465_v1 = vmul.f32 %v1873_v9, %v1464_v12 }
 0x790   : > { %v1466_v13 = vadd.f32 1.4214138, %v1465_v1 }
 0x792   : > { %v1467_v14 = vmul.f32 %v1873_v9, %v1466_v13 }
 0x794   : > { %v1468_v15 = vadd.f32 -0.28449672, %v1467_v14 }
 0x796   : > { %v1469_v16 = vmul.f32 %v1873_v9, %v1468_v15 }
 0x798   : > { %v1470_v17 = vadd.f32 0.2548296, %v1469_v16 }
 0x79a   : > { %v1471_v18 = vmul.f32 %v1873_v9, %v1470_v17 }
 0x79c   : > { %v1476_v20 = vmul.f32 %v1875_v19, %v1471_v18 }
 0x79e   : > { %v1477_v21 = vsub.f32 1.0, %v1476_v20 }
 0x7a0   : > { %v1478_v24 = vmul.f32 %v1477_v21, %v1457_v23 }
 0x7a2   : > { %v1479_v26 = vadd.f32 1.0, %v1478_v24 }
 0x7a4   : > { %v1480_v27 = vmul.f32 %v1479_v26, %v1454_v25 }
 0x7a6   : > { %1827 = vmatmul.mubr.msk.f32.vlgmr.msra.gmra.mxu0 %vm1496_vm6, %v1480_v27 }
 0x866   : > { %v1566_v29 = vpop.f32.mrf.mxu0 }
 0x867   : > { %v1567_v30 = vadd.f32 %v1691_v28, %v1566_v29 }
 0x868   : > { %v1828_v31 = vpop.f32.mrf.mxu0 }
 0x869   : > { %v1570_v32 = vadd.f32 %v1567_v30, %v2134_v52 }
 0x86b   : > { %v1573_v33 = vsel %vm490_vm1, %v1570_v32, 0.0 }
 0x86c   : > { %1574 = vadd.xlane.f32.xlu0 %v1573_v33 }
 0x8f5   : > { %v1575_v34 = vpop.xlane.xlu0 %1574 }
 0x8f6   : > { %v1576_v35 = vmul.f32 0.03125, %v1575_v34 }
 0x8f8   : > { %v1577_v36 = vsub.f32 %v1570_v32, %v1576_v35 }
 0x8fa   : > { %v1578_v37 = vmul.f32 %v1577_v36, %v1577_v36 }
 0x8fc   : > { %v1579_v38 = vsel %vm490_vm1, %v1578_v37, 0.0 }
 0x8fd   : > { %1580 = vadd.xlane.f32.xlu0 %v1579_v38 }
 0x986   : > { %v1581_v39 = vpop.xlane.xlu0 %1580 }
 0x987   : > { %v1582_v40 = vmul.f32 0.03125, %v1581_v39 }
 0x989   : > { %v1583_v41 = vadd.f32 1e-12, %v1582_v40 }
 0x98b   : > { %1876 = vrsqrt.f32 %v1583_v41 }
 0x998   : > { %v1877_v42 = vpop.eup %1876 }
 0x999   : > { %v1585_v43 = vmul.f32 %v1877_v42, %v1577_v36 }
 0x99b   : > { %v1592_v45 = vmul.f32 %v1693_v5, %v1585_v43 }
 0x99d   : > { %v1599_v46 = vadd.f32 %v1694_v44, %v1592_v45 }
 0x99f   : > { %1600 = vst.msk [vmem:[%s476_s15] sm:$0xff] %vm490_vm1, %v1599_v46 }
 0x9a0 PF: > { %s24_s29 = sadd.s32 1, %s1884_s29  }
 0x9a1   : > { %p21_p4 = scmp.ge.s32.totalorder %s24_s29, 4  }
 0x9a3   :  { %23 = sbr.rel (!%p21_p4) target bundleno = 1 (0x1), region = 109 }

</bundles_post_ra>
